<compile_context>
chip_gen: v5e
topology: v5e:2x2
jax: 0.10.0
libtpu: 0.0.40
codegen_flags: <defaults>
</compile_context>

<pallas_src>
from functools import partial

import jax
import jax.numpy as jnp
from jax.experimental import pallas as pl
from jax.experimental.pallas import tpu as pltpu
from jax.scipy.special import erf as _erf_exact


# ----------------------------- shared math helpers -----------------------------

def _layernorm(x, gamma, beta, eps=1e-5):
    # torch.nn.LayerNorm over the last dim (biased variance, eps=1e-5, elementwise affine)
    mu = jnp.mean(x, axis=-1, keepdims=True)
    xc = x - mu
    var = jnp.mean(xc * xc, axis=-1, keepdims=True)
    return xc * jax.lax.rsqrt(var + eps) * gamma + beta


def _gelu_tanh(x):
    # tanh-approximation GELU: the transcendental goes to the otherwise-idle EUP slot instead of
    # ~10 VALU ops/element for an erf polynomial.  |err| vs nn.GELU() (exact erf) < ~1e-3.
    c = 0.7978845608028654  # sqrt(2/pi)
    return 0.5 * x * (1.0 + jnp.tanh(c * (x + 0.044715 * x * x * x)))


def _log_softmax(x):
    m = jnp.max(x, axis=-1, keepdims=True)
    return x - m - jnp.log(jnp.sum(jnp.exp(x - m), axis=-1, keepdims=True))


# ---------------------------------------- fused kernel ----------------------------------------

def fused_kernel(x_ref, pe_ref, wtb1_ref, wtb2_ref, wc1_ref, wc2_ref,
                 rvec_ref, hmat_ref, small_ref, big_ref, *, depth, batch):
    NB = x_ref.shape[0]                   # NB = B * N   (rows ordered row = b*N + n)
    D = pe_ref.shape[-1]
    N = NB // batch
    inner_d = wc1_ref.shape[-1]
    BI = wtb1_ref.shape[-1]               # B * inner_n  (token-mix hidden, batch folded in lanes)

    rvec = rvec_ref[0]                    # (R, 128) packed f32 row vectors

    def row(r, w):
        return rvec[r:r + 1, :w]          # (1, w) lane-dense bias / LN-affine / head row

    # ---- patch embedding: Linear(C -> D); batch*tokens folded into the matmul M dimension ----
    h = jnp.dot(x_ref[...], pe_ref[0], preferred_element_type=jnp.float32) + row(0, D)  # (B*N, D)

    # ---- depth x [token-mixing MLP, channel-mixing MLP], both pre-norm residual ----
    for l in range(depth):
        r0 = 1 + 8 * l

        # token-mixing MLP (Conv1d k=1 mixes the token axis).  The batch is folded into the lane
        # axis through block-diagonal bf16 weights, so each direction is a single lane-dense
        # matmul and every bias add is a row-vector add from the rvec slab.
        y = _layernorm(h, row(r0 + 0, D), row(r0 + 1, D))                    # (B*N, D)
        yt = y.T.astype(jnp.bfloat16)                                        # (D, B*N)
        z = jnp.dot(yt, wtb1_ref[0, l], preferred_element_type=jnp.float32)  # (D, B*inner_n)
        z = _gelu_tanh(z + row(r0 + 2, BI))
        u = jnp.dot(z.astype(jnp.bfloat16), wtb2_ref[0, l],
                    preferred_element_type=jnp.float32) + row(r0 + 3, NB)    # (D, B*N)
        h = h + u.T

        # channel-mixing MLP (Linear D -> D/2 -> D), batched over all B*N tokens
        y = _layernorm(h, row(r0 + 4, D), row(r0 + 5, D))
        z = jnp.dot(y.astype(jnp.bfloat16), wc1_ref[0, l],
                    preferred_element_type=jnp.float32) + row(r0 + 6, inner_d)
        z = _gelu_tanh(z)
        z = jnp.dot(z.astype(jnp.bfloat16), wc2_ref[0, l],
                    preferred_element_type=jnp.float32) + row(r0 + 7, D)
        h = h + z

    # ---- final LayerNorm ----
    h = _layernorm(h, row(1 + 8 * depth, D), row(2 + 8 * depth, D))          # (B*N, D)

    # ---- heads (branch-free: both grid steps write the same lane-dense blocks) ----
    # board[b, n] = <h[b, n, :], w_head>;  proj[b, :] = board[b, :] @ hmat
    # hmat packs [Wc^T | Wl^T] for the value mixer and [Wg^T | 0] for the policy mixer.
    wv = row(3 + 8 * depth, D)                                               # (1, D)
    board = jnp.sum(h * wv, axis=-1, keepdims=True)                          # (B*N, 1)
    hmat = hmat_ref[0]                                                       # (N, 2*num_bins)
    projs = [jnp.sum(board[b * N:(b + 1) * N, :] * hmat, axis=0, keepdims=True)
             for b in range(batch)]                                          # B x (1, 2*num_bins)
    small_ref[0] = jnp.concatenate(projs, axis=0)                            # one dense store
    big_ref[0] = h                                                           # one dense store


# ------------------------------------------ wrapper ------------------------------------------

def neutral_atoms_mlp_forward(features, params, *, depth, num_bins):
    """features: (B, C, board_size) exactly as passed to the PyTorch module."""
    pe_w, wtb1, wtb2, wc1, wc2, rvec, hmat = params
    B, C, N = features.shape
    D = pe_w.shape[-1]
    inner_d = wc1.shape[-1]
    BI = wtb1.shape[-1]
    R, VW = rvec.shape[1], rvec.shape[2]
    nb2 = hmat.shape[-1]

    # unsqueeze(-1) + Rearrange('b c (h p1) (w p2) -> b (h w) (p1 p2 c)', p1=p2=1) == tokens-first
    # (B, N, C); pre-flatten in XLA to a 2-D matmul-ready bf16 slab (rows ordered b*N + n).
    x2d = jnp.transpose(features, (0, 2, 1)).reshape(B * N, C).astype(jnp.bfloat16)

    macs = (B * N * C * D
            + depth * (2 * D * (B * N) * BI + 2 * B * N * D * inner_d)
            + B * N * D + B * N * nb2)
    flops = 2 * 2 * macs                                   # x2 mixers, x2 flops/MAC
    transcend = 2 * (depth * (D * BI + B * N * inner_d) + (4 * depth + 2) * B * N)
    nbytes = (int(x2d.size) * x2d.dtype.itemsize
              + sum(int(p.size) * p.dtype.itemsize
                    for p in (pe_w, wtb1, wtb2, wc1, wc2, rvec, hmat))
              + 4 * (2 * B * nb2 + 2 * B * N * D))

    small, big = pl.pallas_call(
        partial(fused_kernel, depth=depth, batch=B),
        out_shape=(jax.ShapeDtypeStruct((2, B, nb2), jnp.float32),
                   jax.ShapeDtypeStruct((2, B * N, D), jnp.float32)),
        grid=(2,),                                         # one step per (independent) mixer
        in_specs=[
            pl.BlockSpec((B * N, C), lambda m: (0, 0)),                      # tokens (shared)
            pl.BlockSpec((1, C, D), lambda m: (m, 0, 0)),                    # patch-embed W (bf16)
            pl.BlockSpec((1, depth, B * N, BI), lambda m: (m, 0, 0, 0)),     # token-mix W1 (blkdiag)
            pl.BlockSpec((1, depth, BI, B * N), lambda m: (m, 0, 0, 0)),     # token-mix W2 (blkdiag)
            pl.BlockSpec((1, depth, D, inner_d), lambda m: (m, 0, 0, 0)),    # channel-mix W1
            pl.BlockSpec((1, depth, inner_d, D), lambda m: (m, 0, 0, 0)),    # channel-mix W2
            pl.BlockSpec((1, R, VW), lambda m: (m, 0, 0)),                   # packed f32 row vectors
            pl.BlockSpec((1, N, nb2), lambda m: (m, 0, 0)),                  # [Wc^T|Wl^T] / [Wg^T|0]
        ],
        out_specs=[
            pl.BlockSpec((1, B, nb2), lambda m: (m, 0, 0)),                  # cval|lval / gate
            pl.BlockSpec((1, B * N, D), lambda m: (m, 0, 0)),                # mixer output slab
        ],
        compiler_params=pltpu.CompilerParams(dimension_semantics=("parallel",)),
        cost_estimate=pl.CostEstimate(flops=flops, transcendentals=transcend,
                                      bytes_accessed=nbytes),
    )(x2d, pe_w, wtb1, wtb2, wc1, wc2, rvec, hmat)

    # Tiny XLA epilogue (~4 KB of data): log-softmaxes + PyTorch output ordering.
    log_cval = _log_softmax(small[0, :, :num_bins])
    log_lval = _log_softmax(small[0, :, num_bins:])
    gate_logit = small[1, :, 0:1]
    pi = big[1].reshape(B, N, D)
    pi_flat = jnp.transpose(pi, (0, 2, 1)).reshape(B, D * N)   # permute(0,2,1).flatten(1)
    log_pi = _log_softmax(jnp.concatenate([gate_logit, pi_flat], axis=-1))
    return log_cval, log_lval, log_pi


# -------------------------------------- parameter creation ------------------------------------

def _nrm(key, shape, scale=0.02):
    return scale * jax.random.normal(key, shape, dtype=jnp.float32)


def _bf16_round(x):
    # matmul weights are rounded through bf16 so the packed kernel slabs are bit-identical
    return x.astype(jnp.bfloat16).astype(jnp.float32)


def init_raw_params(key, *, C, N, D, depth, num_bins,
                    expansion_factor=4, expansion_factor_token=0.5):
    """Per-mixer MLPMixer weights + head weights in a torch-equivalent layout."""
    inner_n = expansion_factor * N
    inner_d = int(D * expansion_factor_token)
    keys = iter(jax.random.split(key, 2 * (4 + 12 * depth) + 5))
    nxt = lambda: next(keys)

    per_mixer = {k: [] for k in
                 ('pe_w', 'pe_b', 'ln1_g', 'ln1_b', 't_w1', 't_b1', 't_w2', 't_b2',
                  'ln2_g', 'ln2_b', 'c_w1', 'c_b1', 'c_w2', 'c_b2', 'lnf_g', 'lnf_b')}
    for _ in range(2):                                   # the two mixers
        per_mixer['pe_w'].append(_bf16_round(_nrm(nxt(), (C, D))))
        per_mixer['pe_b'].append(_nrm(nxt(), (D,)))
        lg1, lb1, w1, b1, w2, b2, lg2, lb2, cw1, cb1, cw2, cb2 = ([] for _ in range(12))
        for _ in range(depth):
            lg1.append(1.0 + _nrm(nxt(), (D,), 0.1)); lb1.append(_nrm(nxt(), (D,), 0.1))
            w1.append(_bf16_round(_nrm(nxt(), (inner_n, N)))); b1.append(_nrm(nxt(), (inner_n,)))
            w2.append(_bf16_round(_nrm(nxt(), (N, inner_n)))); b2.append(_nrm(nxt(), (N,)))
            lg2.append(1.0 + _nrm(nxt(), (D,), 0.1)); lb2.append(_nrm(nxt(), (D,), 0.1))
            cw1.append(_bf16_round(_nrm(nxt(), (D, inner_d)))); cb1.append(_nrm(nxt(), (inner_d,)))
            cw2.append(_bf16_round(_nrm(nxt(), (inner_d, D)))); cb2.append(_nrm(nxt(), (D,)))
        for name, lst in (('ln1_g', lg1), ('ln1_b', lb1), ('t_w1', w1), ('t_b1', b1),
                          ('t_w2', w2), ('t_b2', b2), ('ln2_g', lg2), ('ln2_b', lb2),
                          ('c_w1', cw1), ('c_b1', cb1), ('c_w2', cw2), ('c_b2', cb2)):
            per_mixer[name].append(jnp.stack(lst))
        per_mixer['lnf_g'].append(1.0 + _nrm(nxt(), (D,), 0.1))
        per_mixer['lnf_b'].append(_nrm(nxt(), (D,), 0.1))

    raw = {k: jnp.stack(v) for k, v in per_mixer.items()}

    hs = 0.02 / 100.0                                    # module divides all head weights by 100
    raw['wv'] = _nrm(nxt(), (D,), hs)                    # W_value      (nqubits,)
    raw['wp'] = _nrm(nxt(), (D,), hs)                    # W_pi         (nqubits,)
    raw['wc'] = _nrm(nxt(), (N, num_bins), hs)           # W_correctness^T
    raw['wl'] = _nrm(nxt(), (N, num_bins), hs)           # W_latency^T
    raw['wg'] = _nrm(nxt(), (N, 1), hs)                  # W_gate_action^T
    return raw


def pack_params(raw, *, batch):
    """Pack raw parameters into the kernel's DMA-friendly slabs (done once, outside jit).

    * matmul weights -> bf16; token-mix weights become block-diagonal over the batch so token
      mixing is one lane-dense (…,128) matmul per direction.
    * every 1-D bias / LayerNorm affine / head vector -> one f32 (R, 128) row slab per mixer
      (lane-dense row adds in-kernel; no (…, 1) column slab).
    * head projection matrices -> one (N, 2*num_bins) slab per mixer.
    """
    B = batch
    _, depth, inner_n, N = raw['t_w1'].shape
    D = raw['pe_w'].shape[-1]
    inner_d = raw['c_w1'].shape[-1]
    num_bins = raw['wc'].shape[-1]
    bf16 = jnp.bfloat16
    eye = jnp.eye(B, dtype=jnp.float32)

    pe_w = raw['pe_w'].astype(bf16)                                               # (2, C, D)
    wtb1 = jnp.einsum('mlin,bc->mlbnci', raw['t_w1'], eye)                        # batch block-diag
    wtb1 = wtb1.reshape(2, depth, B * N, B * inner_n).astype(bf16)
    wtb2 = jnp.einsum('mlni,bc->mlcibn', raw['t_w2'], eye)
    wtb2 = wtb2.reshape(2, depth, B * inner_n, B * N).astype(bf16)
    wc1 = raw['c_w1'].astype(bf16)
    wc2 = raw['c_w2'].astype(bf16)

    R = 4 + 8 * depth
    VW = max(128, -(-max(D, inner_d, B * N, B * inner_n) // 128) * 128)
    rv = jnp.zeros((2, R, VW), jnp.float32)
    rv = rv.at[:, 0, :D].set(raw['pe_b'])
    for l in range(depth):
        r0 = 1 + 8 * l
        rv = rv.at[:, r0 + 0, :D].set(raw['ln1_g'][:, l])
        rv = rv.at[:, r0 + 1, :D].set(raw['ln1_b'][:, l])
        rv = rv.at[:, r0 + 2, :B * inner_n].set(jnp.tile(raw['t_b1'][:, l], (1, B)))
        rv = rv.at[:, r0 + 3, :B * N].set(jnp.tile(raw['t_b2'][:, l], (1, B)))
        rv = rv.at[:, r0 + 4, :D].set(raw['ln2_g'][:, l])
        rv = rv.at[:, r0 + 5, :D].set(raw['ln2_b'][:, l])
        rv = rv.at[:, r0 + 6, :inner_d].set(raw['c_b1'][:, l])
        rv = rv.at[:, r0 + 7, :D].set(raw['c_b2'][:, l])
    rv = rv.at[:, 1 + 8 * depth, :D].set(raw['lnf_g'])
    rv = rv.at[:, 2 + 8 * depth, :D].set(raw['lnf_b'])
    rv = rv.at[0, 3 + 8 * depth, :D].set(raw['wv'])
    rv = rv.at[1, 3 + 8 * depth, :D].set(raw['wp'])

    hmat = jnp.zeros((2, N, 2 * num_bins), jnp.float32)
    hmat = hmat.at[0, :, :num_bins].set(raw['wc'])
    hmat = hmat.at[0, :, num_bins:].set(raw['wl'])
    hmat = hmat.at[1, :, 0:1].set(raw['wg'])

    return pe_w, wtb1, wtb2, wc1, wc2, rv, hmat


# -------------------------------- pure-JAX reference (correctness) ----------------------------

def reference_forward(features, raw, *, depth, num_bins):
    B, _, N = features.shape
    D = raw['pe_w'].shape[-1]
    P = jax.lax.Precision.HIGHEST

    def gelu(v):      # nn.GELU() default: exact erf-based
        return 0.5 * v * (1.0 + _erf_exact(v * 0.7071067811865476))

    # same bf16 input rounding the wrapper applies before the kernel
    x = jnp.transpose(features, (0, 2, 1)).astype(jnp.bfloat16).astype(jnp.float32)  # (B, N, C)

    def mixer(m):
        h = jnp.einsum('bnc,cd->bnd', x, raw['pe_w'][m], precision=P) + raw['pe_b'][m]
        for l in range(depth):
            y = _layernorm(h, raw['ln1_g'][m, l], raw['ln1_b'][m, l])
            z = jnp.einsum('in,bnd->bid', raw['t_w1'][m, l], y, precision=P) \
                + raw['t_b1'][m, l][None, :, None]
            z = gelu(z)
            z = jnp.einsum('ni,bid->bnd', raw['t_w2'][m, l], z, precision=P) \
                + raw['t_b2'][m, l][None, :, None]
            h = h + z
            y = _layernorm(h, raw['ln2_g'][m, l], raw['ln2_b'][m, l])
            z = jnp.einsum('bnd,de->bne', y, raw['c_w1'][m, l], precision=P) + raw['c_b1'][m, l]
            z = gelu(z)
            z = jnp.einsum('bne,ed->bnd', z, raw['c_w2'][m, l], precision=P) + raw['c_b2'][m, l]
            h = h + z
        return _layernorm(h, raw['lnf_g'][m], raw['lnf_b'][m])

    val, pi = mixer(0), mixer(1)
    val_board = jnp.einsum('bnd,d->bn', val, raw['wv'], precision=P)
    pi_board = jnp.einsum('bnd,d->bn', pi, raw['wp'], precision=P)
    cval = jnp.einsum('bn,nk->bk', val_board, raw['wc'], precision=P)
    lval = jnp.einsum('bn,nk->bk', val_board, raw['wl'], precision=P)
    gate = jnp.einsum('bn,nk->bk', pi_board, raw['wg'], precision=P)
    pi_cat = jnp.concatenate([gate, jnp.transpose(pi, (0, 2, 1)).reshape(B, D * N)], axis=-1)
    return _log_softmax(cval), _log_softmax(lval), _log_softmax(pi_cat)


# ---------------------------------------------- main ------------------------------------------

if __name__ == "__main__":
    B, C, N, D = 2, 4, 16, 32       # batch, channels, board_size (=num_patches), dim (=nqubits)
    depth, num_bins = 2, 8

    key = jax.random.PRNGKey(0)
    k_feat, k_par = jax.random.split(key)
    features = jax.random.normal(k_feat, (B, C, N), dtype=jnp.float32)
    raw = init_raw_params(k_par, C=C, N=N, D=D, depth=depth, num_bins=num_bins)
    params = pack_params(raw, batch=B)

    fwd = jax.jit(partial(neutral_atoms_mlp_forward, depth=depth, num_bins=num_bins))
    log_cval, log_lval, log_pi = fwd(features, params)
    jax.block_until_ready((log_cval, log_lval, log_pi))

    assert log_cval.shape == (B, num_bins)
    assert log_lval.shape == (B, num_bins)
    assert log_pi.shape == (B, 1 + D * N)

    # structural sanity check against a pure-JAX reference of the PyTorch forward
    # (divergence sources: bf16 activation casts before each MXU op, tanh vs erf GELU)
    ref_c, ref_l, ref_p = reference_forward(features, raw, depth=depth, num_bins=num_bins)
    for got, want in ((log_cval, ref_c), (log_lval, ref_l), (log_pi, ref_p)):
        assert float(jnp.max(jnp.abs(got - want))) < 2e-2

    print("KERNEL_OK")
</pallas_src>

<mosaic_0001>
module attributes {stable_mosaic.version = 11 : i64} {
  func.func @fused_kernel(%arg0: i32, %arg1: memref<32x4xbf16, #tpu.memory_space<vmem>>, %arg2: memref<1x4x32xbf16, #tpu.memory_space<vmem>>, %arg3: memref<1x2x32x128xbf16, #tpu.memory_space<vmem>>, %arg4: memref<1x2x128x32xbf16, #tpu.memory_space<vmem>>, %arg5: memref<1x2x32x16xbf16, #tpu.memory_space<vmem>>, %arg6: memref<1x2x16x32xbf16, #tpu.memory_space<vmem>>, %arg7: memref<1x20x128xf32, #tpu.memory_space<vmem>>, %arg8: memref<1x16x16xf32, #tpu.memory_space<vmem>>, %arg9: memref<1x2x16xf32, #tpu.memory_space<vmem>>, %arg10: memref<1x32x32xf32, #tpu.memory_space<vmem>>) attributes {dimension_semantics = [#tpu.dimension_semantics<parallel>], iteration_bounds = array<i64: 2>, scalar_prefetch = 0 : i64, scratch_operands = 0 : i64, tpu.core_type = #tpu.core_type<tc>, window_params = [{pipeline_mode = #tpu.pipeline_mode<synchronous>, transform_indices = @transform_0, window_bounds = array<i64: 32, 4>}, {transform_indices = @transform_1, window_bounds = array<i64: 1, 4, 32>}, {transform_indices = @transform_2, window_bounds = array<i64: 1, 2, 32, 128>}, {transform_indices = @transform_3, window_bounds = array<i64: 1, 2, 128, 32>}, {transform_indices = @transform_4, window_bounds = array<i64: 1, 2, 32, 16>}, {transform_indices = @transform_5, window_bounds = array<i64: 1, 2, 16, 32>}, {transform_indices = @transform_6, window_bounds = array<i64: 1, 20, 128>}, {transform_indices = @transform_7, window_bounds = array<i64: 1, 16, 16>}, {transform_indices = @transform_8, window_bounds = array<i64: 1, 2, 16>}, {transform_indices = @transform_9, window_bounds = array<i64: 1, 32, 32>}]} {
    %c0 = arith.constant 0 : index
    %c0_0 = arith.constant 0 : index
    %c0_1 = arith.constant 0 : index
    %0 = vector.load %arg7[%c0, %c0_0, %c0_1] : memref<1x20x128xf32, #tpu.memory_space<vmem>>, vector<1x20x128xf32>
    %1 = vector.shape_cast %0 : vector<1x20x128xf32> to vector<20x128xf32>
    %c0_2 = arith.constant 0 : index
    %c0_3 = arith.constant 0 : index
    %2 = vector.load %arg1[%c0_2, %c0_3] : memref<32x4xbf16, #tpu.memory_space<vmem>>, vector<32x4xbf16>
    %c0_4 = arith.constant 0 : index
    %c0_5 = arith.constant 0 : index
    %c0_6 = arith.constant 0 : index
    %3 = vector.load %arg2[%c0_4, %c0_5, %c0_6] : memref<1x4x32xbf16, #tpu.memory_space<vmem>>, vector<1x4x32xbf16>
    %4 = vector.shape_cast %3 : vector<1x4x32xbf16> to vector<4x32xbf16>
    %cst = arith.constant dense<0.000000e+00> : vector<32x32xf32>
    %5 = tpu.matmul %2, %4, %cst {dimension_numbers = #tpu.dot_dimension_numbers<[1], [0], [0], [1], [0, 0, 1, 1], [], []>} : vector<32x4xbf16>, vector<4x32xbf16>, vector<32x32xf32> -> vector<32x32xf32>
    %6 = vector.extract_strided_slice %1 {offsets = [0, 0], sizes = [1, 32], strides = [1, 1]} : vector<20x128xf32> to vector<1x32xf32>
    %7 = vector.broadcast %6 : vector<1x32xf32> to vector<32x32xf32>
    %8 = arith.addf %5, %7 : vector<32x32xf32>
    %9 = vector.extract_strided_slice %1 {offsets = [1, 0], sizes = [1, 32], strides = [1, 1]} : vector<20x128xf32> to vector<1x32xf32>
    %10 = vector.extract_strided_slice %1 {offsets = [2, 0], sizes = [1, 32], strides = [1, 1]} : vector<20x128xf32> to vector<1x32xf32>
    %cst_7 = arith.constant dense<0.000000e+00> : vector<32xf32>
    %11 = vector.multi_reduction <add>, %8, %cst_7 [1] : vector<32x32xf32> to vector<32xf32>
    %12 = vector.shape_cast %11 : vector<32xf32> to vector<32x1xf32>
    %cst_8 = arith.constant 3.200000e+01 : f32
    %13 = vector.broadcast %cst_8 : f32 to vector<32x1xf32>
    %14 = arith.divf %12, %13 : vector<32x1xf32>
    %15 = vector.broadcast %14 : vector<32x1xf32> to vector<32x32xf32>
    %16 = arith.subf %8, %15 : vector<32x32xf32>
    %17 = arith.mulf %16, %16 : vector<32x32xf32>
    %cst_9 = arith.constant dense<0.000000e+00> : vector<32xf32>
    %18 = vector.multi_reduction <add>, %17, %cst_9 [1] : vector<32x32xf32> to vector<32xf32>
    %19 = vector.shape_cast %18 : vector<32xf32> to vector<32x1xf32>
    %cst_10 = arith.constant 3.200000e+01 : f32
    %20 = vector.broadcast %cst_10 : f32 to vector<32x1xf32>
    %21 = arith.divf %19, %20 : vector<32x1xf32>
    %cst_11 = arith.constant 9.99999974E-6 : f32
    %22 = vector.broadcast %cst_11 : f32 to vector<32x1xf32>
    %23 = arith.addf %21, %22 : vector<32x1xf32>
    %24 = math.rsqrt %23 : vector<32x1xf32>
    %25 = vector.broadcast %24 : vector<32x1xf32> to vector<32x32xf32>
    %26 = arith.mulf %16, %25 : vector<32x32xf32>
    %27 = vector.broadcast %9 : vector<1x32xf32> to vector<32x32xf32>
    %28 = arith.mulf %26, %27 : vector<32x32xf32>
    %29 = vector.broadcast %10 : vector<1x32xf32> to vector<32x32xf32>
    %30 = arith.addf %28, %29 : vector<32x32xf32>
    %31 = tpu.transpose %30, [1, 0] : vector<32x32xf32> -> vector<32x32xf32>
    %32 = arith.truncf %31 : vector<32x32xf32> to vector<32x32xbf16>
    %c0_12 = arith.constant 0 : index
    %c0_13 = arith.constant 0 : index
    %c0_14 = arith.constant 0 : index
    %c0_15 = arith.constant 0 : index
    %33 = vector.load %arg3[%c0_12, %c0_13, %c0_14, %c0_15] : memref<1x2x32x128xbf16, #tpu.memory_space<vmem>>, vector<1x1x32x128xbf16>
    %34 = vector.shape_cast %33 : vector<1x1x32x128xbf16> to vector<32x128xbf16>
    %cst_16 = arith.constant dense<0.000000e+00> : vector<32x128xf32>
    %35 = tpu.matmul %32, %34, %cst_16 {dimension_numbers = #tpu.dot_dimension_numbers<[1], [0], [0], [1], [0, 0, 1, 1], [], []>} : vector<32x32xbf16>, vector<32x128xbf16>, vector<32x128xf32> -> vector<32x128xf32>
    %36 = vector.extract_strided_slice %1 {offsets = [3, 0], sizes = [1, 128], strides = [1, 1]} : vector<20x128xf32> to vector<1x128xf32>
    %37 = vector.broadcast %36 : vector<1x128xf32> to vector<32x128xf32>
    %38 = arith.addf %35, %37 : vector<32x128xf32>
    %cst_17 = arith.constant 5.000000e-01 : f32
    %39 = vector.broadcast %cst_17 : f32 to vector<32x128xf32>
    %40 = arith.mulf %39, %38 : vector<32x128xf32>
    %cst_18 = arith.constant 4.471500e-02 : f32
    %41 = vector.broadcast %cst_18 : f32 to vector<32x128xf32>
    %42 = arith.mulf %41, %38 : vector<32x128xf32>
    %43 = arith.mulf %42, %38 : vector<32x128xf32>
    %44 = arith.mulf %43, %38 : vector<32x128xf32>
    %45 = arith.addf %38, %44 : vector<32x128xf32>
    %cst_19 = arith.constant 0.797884583 : f32
    %46 = vector.broadcast %cst_19 : f32 to vector<32x128xf32>
    %47 = arith.mulf %46, %45 : vector<32x128xf32>
    %48 = math.tanh %47 : vector<32x128xf32>
    %cst_20 = arith.constant 1.000000e+00 : f32
    %49 = vector.broadcast %cst_20 : f32 to vector<32x128xf32>
    %50 = arith.addf %49, %48 : vector<32x128xf32>
    %51 = arith.mulf %40, %50 : vector<32x128xf32>
    %52 = arith.truncf %51 : vector<32x128xf32> to vector<32x128xbf16>
    %c0_21 = arith.constant 0 : index
    %c0_22 = arith.constant 0 : index
    %c0_23 = arith.constant 0 : index
    %c0_24 = arith.constant 0 : index
    %53 = vector.load %arg4[%c0_21, %c0_22, %c0_23, %c0_24] : memref<1x2x128x32xbf16, #tpu.memory_space<vmem>>, vector<1x1x128x32xbf16>
    %54 = vector.shape_cast %53 : vector<1x1x128x32xbf16> to vector<128x32xbf16>
    %cst_25 = arith.constant dense<0.000000e+00> : vector<32x32xf32>
    %55 = tpu.matmul %52, %54, %cst_25 {dimension_numbers = #tpu.dot_dimension_numbers<[1], [0], [0], [1], [0, 0, 1, 1], [], []>} : vector<32x128xbf16>, vector<128x32xbf16>, vector<32x32xf32> -> vector<32x32xf32>
    %56 = vector.extract_strided_slice %1 {offsets = [4, 0], sizes = [1, 32], strides = [1, 1]} : vector<20x128xf32> to vector<1x32xf32>
    %57 = vector.broadcast %56 : vector<1x32xf32> to vector<32x32xf32>
    %58 = arith.addf %55, %57 : vector<32x32xf32>
    %59 = tpu.transpose %58, [1, 0] : vector<32x32xf32> -> vector<32x32xf32>
    %60 = arith.addf %8, %59 : vector<32x32xf32>
    %61 = vector.extract_strided_slice %1 {offsets = [5, 0], sizes = [1, 32], strides = [1, 1]} : vector<20x128xf32> to vector<1x32xf32>
    %62 = vector.extract_strided_slice %1 {offsets = [6, 0], sizes = [1, 32], strides = [1, 1]} : vector<20x128xf32> to vector<1x32xf32>
    %cst_26 = arith.constant dense<0.000000e+00> : vector<32xf32>
    %63 = vector.multi_reduction <add>, %60, %cst_26 [1] : vector<32x32xf32> to vector<32xf32>
    %64 = vector.shape_cast %63 : vector<32xf32> to vector<32x1xf32>
    %cst_27 = arith.constant 3.200000e+01 : f32
    %65 = vector.broadcast %cst_27 : f32 to vector<32x1xf32>
    %66 = arith.divf %64, %65 : vector<32x1xf32>
    %67 = vector.broadcast %66 : vector<32x1xf32> to vector<32x32xf32>
    %68 = arith.subf %60, %67 : vector<32x32xf32>
    %69 = arith.mulf %68, %68 : vector<32x32xf32>
    %cst_28 = arith.constant dense<0.000000e+00> : vector<32xf32>
    %70 = vector.multi_reduction <add>, %69, %cst_28 [1] : vector<32x32xf32> to vector<32xf32>
    %71 = vector.shape_cast %70 : vector<32xf32> to vector<32x1xf32>
    %cst_29 = arith.constant 3.200000e+01 : f32
    %72 = vector.broadcast %cst_29 : f32 to vector<32x1xf32>
    %73 = arith.divf %71, %72 : vector<32x1xf32>
    %cst_30 = arith.constant 9.99999974E-6 : f32
    %74 = vector.broadcast %cst_30 : f32 to vector<32x1xf32>
    %75 = arith.addf %73, %74 : vector<32x1xf32>
    %76 = math.rsqrt %75 : vector<32x1xf32>
    %77 = vector.broadcast %76 : vector<32x1xf32> to vector<32x32xf32>
    %78 = arith.mulf %68, %77 : vector<32x32xf32>
    %79 = vector.broadcast %61 : vector<1x32xf32> to vector<32x32xf32>
    %80 = arith.mulf %78, %79 : vector<32x32xf32>
    %81 = vector.broadcast %62 : vector<1x32xf32> to vector<32x32xf32>
    %82 = arith.addf %80, %81 : vector<32x32xf32>
    %83 = arith.truncf %82 : vector<32x32xf32> to vector<32x32xbf16>
    %c0_31 = arith.constant 0 : index
    %c0_32 = arith.constant 0 : index
    %c0_33 = arith.constant 0 : index
    %c0_34 = arith.constant 0 : index
    %84 = vector.load %arg5[%c0_31, %c0_32, %c0_33, %c0_34] : memref<1x2x32x16xbf16, #tpu.memory_space<vmem>>, vector<1x1x32x16xbf16>
    %85 = vector.shape_cast %84 : vector<1x1x32x16xbf16> to vector<32x16xbf16>
    %cst_35 = arith.constant dense<0.000000e+00> : vector<32x16xf32>
    %86 = tpu.matmul %83, %85, %cst_35 {dimension_numbers = #tpu.dot_dimension_numbers<[1], [0], [0], [1], [0, 0, 1, 1], [], []>} : vector<32x32xbf16>, vector<32x16xbf16>, vector<32x16xf32> -> vector<32x16xf32>
    %87 = vector.extract_strided_slice %1 {offsets = [7, 0], sizes = [1, 16], strides = [1, 1]} : vector<20x128xf32> to vector<1x16xf32>
    %88 = vector.broadcast %87 : vector<1x16xf32> to vector<32x16xf32>
    %89 = arith.addf %86, %88 : vector<32x16xf32>
    %cst_36 = arith.constant 5.000000e-01 : f32
    %90 = vector.broadcast %cst_36 : f32 to vector<32x16xf32>
    %91 = arith.mulf %90, %89 : vector<32x16xf32>
    %cst_37 = arith.constant 4.471500e-02 : f32
    %92 = vector.broadcast %cst_37 : f32 to vector<32x16xf32>
    %93 = arith.mulf %92, %89 : vector<32x16xf32>
    %94 = arith.mulf %93, %89 : vector<32x16xf32>
    %95 = arith.mulf %94, %89 : vector<32x16xf32>
    %96 = arith.addf %89, %95 : vector<32x16xf32>
    %cst_38 = arith.constant 0.797884583 : f32
    %97 = vector.broadcast %cst_38 : f32 to vector<32x16xf32>
    %98 = arith.mulf %97, %96 : vector<32x16xf32>
    %99 = math.tanh %98 : vector<32x16xf32>
    %cst_39 = arith.constant 1.000000e+00 : f32
    %100 = vector.broadcast %cst_39 : f32 to vector<32x16xf32>
    %101 = arith.addf %100, %99 : vector<32x16xf32>
    %102 = arith.mulf %91, %101 : vector<32x16xf32>
    %103 = arith.truncf %102 : vector<32x16xf32> to vector<32x16xbf16>
    %c0_40 = arith.constant 0 : index
    %c0_41 = arith.constant 0 : index
    %c0_42 = arith.constant 0 : index
    %c0_43 = arith.constant 0 : index
    %104 = vector.load %arg6[%c0_40, %c0_41, %c0_42, %c0_43] : memref<1x2x16x32xbf16, #tpu.memory_space<vmem>>, vector<1x1x16x32xbf16>
    %105 = vector.shape_cast %104 : vector<1x1x16x32xbf16> to vector<16x32xbf16>
    %cst_44 = arith.constant dense<0.000000e+00> : vector<32x32xf32>
    %106 = tpu.matmul %103, %105, %cst_44 {dimension_numbers = #tpu.dot_dimension_numbers<[1], [0], [0], [1], [0, 0, 1, 1], [], []>} : vector<32x16xbf16>, vector<16x32xbf16>, vector<32x32xf32> -> vector<32x32xf32>
    %107 = vector.extract_strided_slice %1 {offsets = [8, 0], sizes = [1, 32], strides = [1, 1]} : vector<20x128xf32> to vector<1x32xf32>
    %108 = vector.broadcast %107 : vector<1x32xf32> to vector<32x32xf32>
    %109 = arith.addf %106, %108 : vector<32x32xf32>
    %110 = arith.addf %60, %109 : vector<32x32xf32>
    %111 = vector.extract_strided_slice %1 {offsets = [9, 0], sizes = [1, 32], strides = [1, 1]} : vector<20x128xf32> to vector<1x32xf32>
    %112 = vector.extract_strided_slice %1 {offsets = [10, 0], sizes = [1, 32], strides = [1, 1]} : vector<20x128xf32> to vector<1x32xf32>
    %cst_45 = arith.constant dense<0.000000e+00> : vector<32xf32>
    %113 = vector.multi_reduction <add>, %110, %cst_45 [1] : vector<32x32xf32> to vector<32xf32>
    %114 = vector.shape_cast %113 : vector<32xf32> to vector<32x1xf32>
    %cst_46 = arith.constant 3.200000e+01 : f32
    %115 = vector.broadcast %cst_46 : f32 to vector<32x1xf32>
    %116 = arith.divf %114, %115 : vector<32x1xf32>
    %117 = vector.broadcast %116 : vector<32x1xf32> to vector<32x32xf32>
    %118 = arith.subf %110, %117 : vector<32x32xf32>
    %119 = arith.mulf %118, %118 : vector<32x32xf32>
    %cst_47 = arith.constant dense<0.000000e+00> : vector<32xf32>
    %120 = vector.multi_reduction <add>, %119, %cst_47 [1] : vector<32x32xf32> to vector<32xf32>
    %121 = vector.shape_cast %120 : vector<32xf32> to vector<32x1xf32>
    %cst_48 = arith.constant 3.200000e+01 : f32
    %122 = vector.broadcast %cst_48 : f32 to vector<32x1xf32>
    %123 = arith.divf %121, %122 : vector<32x1xf32>
    %cst_49 = arith.constant 9.99999974E-6 : f32
    %124 = vector.broadcast %cst_49 : f32 to vector<32x1xf32>
    %125 = arith.addf %123, %124 : vector<32x1xf32>
    %126 = math.rsqrt %125 : vector<32x1xf32>
    %127 = vector.broadcast %126 : vector<32x1xf32> to vector<32x32xf32>
    %128 = arith.mulf %118, %127 : vector<32x32xf32>
    %129 = vector.broadcast %111 : vector<1x32xf32> to vector<32x32xf32>
    %130 = arith.mulf %128, %129 : vector<32x32xf32>
    %131 = vector.broadcast %112 : vector<1x32xf32> to vector<32x32xf32>
    %132 = arith.addf %130, %131 : vector<32x32xf32>
    %133 = tpu.transpose %132, [1, 0] : vector<32x32xf32> -> vector<32x32xf32>
    %134 = arith.truncf %133 : vector<32x32xf32> to vector<32x32xbf16>
    %c0_50 = arith.constant 0 : index
    %c1 = arith.constant 1 : index
    %c0_51 = arith.constant 0 : index
    %c0_52 = arith.constant 0 : index
    %135 = vector.load %arg3[%c0_50, %c1, %c0_51, %c0_52] : memref<1x2x32x128xbf16, #tpu.memory_space<vmem>>, vector<1x1x32x128xbf16>
    %136 = vector.shape_cast %135 : vector<1x1x32x128xbf16> to vector<32x128xbf16>
    %cst_53 = arith.constant dense<0.000000e+00> : vector<32x128xf32>
    %137 = tpu.matmul %134, %136, %cst_53 {dimension_numbers = #tpu.dot_dimension_numbers<[1], [0], [0], [1], [0, 0, 1, 1], [], []>} : vector<32x32xbf16>, vector<32x128xbf16>, vector<32x128xf32> -> vector<32x128xf32>
    %138 = vector.extract_strided_slice %1 {offsets = [11, 0], sizes = [1, 128], strides = [1, 1]} : vector<20x128xf32> to vector<1x128xf32>
    %139 = vector.broadcast %138 : vector<1x128xf32> to vector<32x128xf32>
    %140 = arith.addf %137, %139 : vector<32x128xf32>
    %cst_54 = arith.constant 5.000000e-01 : f32
    %141 = vector.broadcast %cst_54 : f32 to vector<32x128xf32>
    %142 = arith.mulf %141, %140 : vector<32x128xf32>
    %cst_55 = arith.constant 4.471500e-02 : f32
    %143 = vector.broadcast %cst_55 : f32 to vector<32x128xf32>
    %144 = arith.mulf %143, %140 : vector<32x128xf32>
    %145 = arith.mulf %144, %140 : vector<32x128xf32>
    %146 = arith.mulf %145, %140 : vector<32x128xf32>
    %147 = arith.addf %140, %146 : vector<32x128xf32>
    %cst_56 = arith.constant 0.797884583 : f32
    %148 = vector.broadcast %cst_56 : f32 to vector<32x128xf32>
    %149 = arith.mulf %148, %147 : vector<32x128xf32>
    %150 = math.tanh %149 : vector<32x128xf32>
    %cst_57 = arith.constant 1.000000e+00 : f32
    %151 = vector.broadcast %cst_57 : f32 to vector<32x128xf32>
    %152 = arith.addf %151, %150 : vector<32x128xf32>
    %153 = arith.mulf %142, %152 : vector<32x128xf32>
    %154 = arith.truncf %153 : vector<32x128xf32> to vector<32x128xbf16>
    %c0_58 = arith.constant 0 : index
    %c1_59 = arith.constant 1 : index
    %c0_60 = arith.constant 0 : index
    %c0_61 = arith.constant 0 : index
    %155 = vector.load %arg4[%c0_58, %c1_59, %c0_60, %c0_61] : memref<1x2x128x32xbf16, #tpu.memory_space<vmem>>, vector<1x1x128x32xbf16>
    %156 = vector.shape_cast %155 : vector<1x1x128x32xbf16> to vector<128x32xbf16>
    %cst_62 = arith.constant dense<0.000000e+00> : vector<32x32xf32>
    %157 = tpu.matmul %154, %156, %cst_62 {dimension_numbers = #tpu.dot_dimension_numbers<[1], [0], [0], [1], [0, 0, 1, 1], [], []>} : vector<32x128xbf16>, vector<128x32xbf16>, vector<32x32xf32> -> vector<32x32xf32>
    %158 = vector.extract_strided_slice %1 {offsets = [12, 0], sizes = [1, 32], strides = [1, 1]} : vector<20x128xf32> to vector<1x32xf32>
    %159 = vector.broadcast %158 : vector<1x32xf32> to vector<32x32xf32>
    %160 = arith.addf %157, %159 : vector<32x32xf32>
    %161 = tpu.transpose %160, [1, 0] : vector<32x32xf32> -> vector<32x32xf32>
    %162 = arith.addf %110, %161 : vector<32x32xf32>
    %163 = vector.extract_strided_slice %1 {offsets = [13, 0], sizes = [1, 32], strides = [1, 1]} : vector<20x128xf32> to vector<1x32xf32>
    %164 = vector.extract_strided_slice %1 {offsets = [14, 0], sizes = [1, 32], strides = [1, 1]} : vector<20x128xf32> to vector<1x32xf32>
    %cst_63 = arith.constant dense<0.000000e+00> : vector<32xf32>
    %165 = vector.multi_reduction <add>, %162, %cst_63 [1] : vector<32x32xf32> to vector<32xf32>
    %166 = vector.shape_cast %165 : vector<32xf32> to vector<32x1xf32>
    %cst_64 = arith.constant 3.200000e+01 : f32
    %167 = vector.broadcast %cst_64 : f32 to vector<32x1xf32>
    %168 = arith.divf %166, %167 : vector<32x1xf32>
    %169 = vector.broadcast %168 : vector<32x1xf32> to vector<32x32xf32>
    %170 = arith.subf %162, %169 : vector<32x32xf32>
    %171 = arith.mulf %170, %170 : vector<32x32xf32>
    %cst_65 = arith.constant dense<0.000000e+00> : vector<32xf32>
    %172 = vector.multi_reduction <add>, %171, %cst_65 [1] : vector<32x32xf32> to vector<32xf32>
    %173 = vector.shape_cast %172 : vector<32xf32> to vector<32x1xf32>
    %cst_66 = arith.constant 3.200000e+01 : f32
    %174 = vector.broadcast %cst_66 : f32 to vector<32x1xf32>
    %175 = arith.divf %173, %174 : vector<32x1xf32>
    %cst_67 = arith.constant 9.99999974E-6 : f32
    %176 = vector.broadcast %cst_67 : f32 to vector<32x1xf32>
    %177 = arith.addf %175, %176 : vector<32x1xf32>
    %178 = math.rsqrt %177 : vector<32x1xf32>
    %179 = vector.broadcast %178 : vector<32x1xf32> to vector<32x32xf32>
    %180 = arith.mulf %170, %179 : vector<32x32xf32>
    %181 = vector.broadcast %163 : vector<1x32xf32> to vector<32x32xf32>
    %182 = arith.mulf %180, %181 : vector<32x32xf32>
    %183 = vector.broadcast %164 : vector<1x32xf32> to vector<32x32xf32>
    %184 = arith.addf %182, %183 : vector<32x32xf32>
    %185 = arith.truncf %184 : vector<32x32xf32> to vector<32x32xbf16>
    %c0_68 = arith.constant 0 : index
    %c1_69 = arith.constant 1 : index
    %c0_70 = arith.constant 0 : index
    %c0_71 = arith.constant 0 : index
    %186 = vector.load %arg5[%c0_68, %c1_69, %c0_70, %c0_71] : memref<1x2x32x16xbf16, #tpu.memory_space<vmem>>, vector<1x1x32x16xbf16>
    %187 = vector.shape_cast %186 : vector<1x1x32x16xbf16> to vector<32x16xbf16>
    %cst_72 = arith.constant dense<0.000000e+00> : vector<32x16xf32>
    %188 = tpu.matmul %185, %187, %cst_72 {dimension_numbers = #tpu.dot_dimension_numbers<[1], [0], [0], [1], [0, 0, 1, 1], [], []>} : vector<32x32xbf16>, vector<32x16xbf16>, vector<32x16xf32> -> vector<32x16xf32>
    %189 = vector.extract_strided_slice %1 {offsets = [15, 0], sizes = [1, 16], strides = [1, 1]} : vector<20x128xf32> to vector<1x16xf32>
    %190 = vector.broadcast %189 : vector<1x16xf32> to vector<32x16xf32>
    %191 = arith.addf %188, %190 : vector<32x16xf32>
    %cst_73 = arith.constant 5.000000e-01 : f32
    %192 = vector.broadcast %cst_73 : f32 to vector<32x16xf32>
    %193 = arith.mulf %192, %191 : vector<32x16xf32>
    %cst_74 = arith.constant 4.471500e-02 : f32
    %194 = vector.broadcast %cst_74 : f32 to vector<32x16xf32>
    %195 = arith.mulf %194, %191 : vector<32x16xf32>
    %196 = arith.mulf %195, %191 : vector<32x16xf32>
    %197 = arith.mulf %196, %191 : vector<32x16xf32>
    %198 = arith.addf %191, %197 : vector<32x16xf32>
    %cst_75 = arith.constant 0.797884583 : f32
    %199 = vector.broadcast %cst_75 : f32 to vector<32x16xf32>
    %200 = arith.mulf %199, %198 : vector<32x16xf32>
    %201 = math.tanh %200 : vector<32x16xf32>
    %cst_76 = arith.constant 1.000000e+00 : f32
    %202 = vector.broadcast %cst_76 : f32 to vector<32x16xf32>
    %203 = arith.addf %202, %201 : vector<32x16xf32>
    %204 = arith.mulf %193, %203 : vector<32x16xf32>
    %205 = arith.truncf %204 : vector<32x16xf32> to vector<32x16xbf16>
    %c0_77 = arith.constant 0 : index
    %c1_78 = arith.constant 1 : index
    %c0_79 = arith.constant 0 : index
    %c0_80 = arith.constant 0 : index
    %206 = vector.load %arg6[%c0_77, %c1_78, %c0_79, %c0_80] : memref<1x2x16x32xbf16, #tpu.memory_space<vmem>>, vector<1x1x16x32xbf16>
    %207 = vector.shape_cast %206 : vector<1x1x16x32xbf16> to vector<16x32xbf16>
    %cst_81 = arith.constant dense<0.000000e+00> : vector<32x32xf32>
    %208 = tpu.matmul %205, %207, %cst_81 {dimension_numbers = #tpu.dot_dimension_numbers<[1], [0], [0], [1], [0, 0, 1, 1], [], []>} : vector<32x16xbf16>, vector<16x32xbf16>, vector<32x32xf32> -> vector<32x32xf32>
    %209 = vector.extract_strided_slice %1 {offsets = [16, 0], sizes = [1, 32], strides = [1, 1]} : vector<20x128xf32> to vector<1x32xf32>
    %210 = vector.broadcast %209 : vector<1x32xf32> to vector<32x32xf32>
    %211 = arith.addf %208, %210 : vector<32x32xf32>
    %212 = arith.addf %162, %211 : vector<32x32xf32>
    %213 = vector.extract_strided_slice %1 {offsets = [17, 0], sizes = [1, 32], strides = [1, 1]} : vector<20x128xf32> to vector<1x32xf32>
    %214 = vector.extract_strided_slice %1 {offsets = [18, 0], sizes = [1, 32], strides = [1, 1]} : vector<20x128xf32> to vector<1x32xf32>
    %cst_82 = arith.constant dense<0.000000e+00> : vector<32xf32>
    %215 = vector.multi_reduction <add>, %212, %cst_82 [1] : vector<32x32xf32> to vector<32xf32>
    %216 = vector.shape_cast %215 : vector<32xf32> to vector<32x1xf32>
    %cst_83 = arith.constant 3.200000e+01 : f32
    %217 = vector.broadcast %cst_83 : f32 to vector<32x1xf32>
    %218 = arith.divf %216, %217 : vector<32x1xf32>
    %219 = vector.broadcast %218 : vector<32x1xf32> to vector<32x32xf32>
    %220 = arith.subf %212, %219 : vector<32x32xf32>
    %221 = arith.mulf %220, %220 : vector<32x32xf32>
    %cst_84 = arith.constant dense<0.000000e+00> : vector<32xf32>
    %222 = vector.multi_reduction <add>, %221, %cst_84 [1] : vector<32x32xf32> to vector<32xf32>
    %223 = vector.shape_cast %222 : vector<32xf32> to vector<32x1xf32>
    %cst_85 = arith.constant 3.200000e+01 : f32
    %224 = vector.broadcast %cst_85 : f32 to vector<32x1xf32>
    %225 = arith.divf %223, %224 : vector<32x1xf32>
    %cst_86 = arith.constant 9.99999974E-6 : f32
    %226 = vector.broadcast %cst_86 : f32 to vector<32x1xf32>
    %227 = arith.addf %225, %226 : vector<32x1xf32>
    %228 = math.rsqrt %227 : vector<32x1xf32>
    %229 = vector.broadcast %228 : vector<32x1xf32> to vector<32x32xf32>
    %230 = arith.mulf %220, %229 : vector<32x32xf32>
    %231 = vector.broadcast %213 : vector<1x32xf32> to vector<32x32xf32>
    %232 = arith.mulf %230, %231 : vector<32x32xf32>
    %233 = vector.broadcast %214 : vector<1x32xf32> to vector<32x32xf32>
    %234 = arith.addf %232, %233 : vector<32x32xf32>
    %235 = vector.extract_strided_slice %1 {offsets = [19, 0], sizes = [1, 32], strides = [1, 1]} : vector<20x128xf32> to vector<1x32xf32>
    %236 = vector.broadcast %235 : vector<1x32xf32> to vector<32x32xf32>
    %237 = arith.mulf %234, %236 : vector<32x32xf32>
    %cst_87 = arith.constant dense<0.000000e+00> : vector<32xf32>
    %238 = vector.multi_reduction <add>, %237, %cst_87 [1] : vector<32x32xf32> to vector<32xf32>
    %239 = vector.shape_cast %238 : vector<32xf32> to vector<32x1xf32>
    %c0_88 = arith.constant 0 : index
    %c0_89 = arith.constant 0 : index
    %c0_90 = arith.constant 0 : index
    %240 = vector.load %arg8[%c0_88, %c0_89, %c0_90] : memref<1x16x16xf32, #tpu.memory_space<vmem>>, vector<1x16x16xf32>
    %241 = vector.shape_cast %240 : vector<1x16x16xf32> to vector<16x16xf32>
    %242 = vector.extract_strided_slice %239 {offsets = [0, 0], sizes = [16, 1], strides = [1, 1]} : vector<32x1xf32> to vector<16x1xf32>
    %243 = vector.broadcast %242 : vector<16x1xf32> to vector<16x16xf32>
    %244 = arith.mulf %243, %241 : vector<16x16xf32>
    %cst_91 = arith.constant dense<0.000000e+00> : vector<16xf32>
    %245 = vector.multi_reduction <add>, %244, %cst_91 [0] : vector<16x16xf32> to vector<16xf32>
    %246 = vector.shape_cast %245 : vector<16xf32> to vector<1x16xf32>
    %247 = vector.extract_strided_slice %239 {offsets = [16, 0], sizes = [16, 1], strides = [1, 1]} : vector<32x1xf32> to vector<16x1xf32>
    %248 = vector.broadcast %247 : vector<16x1xf32> to vector<16x16xf32>
    %249 = arith.mulf %248, %241 : vector<16x16xf32>
    %cst_92 = arith.constant dense<0.000000e+00> : vector<16xf32>
    %250 = vector.multi_reduction <add>, %249, %cst_92 [0] : vector<16x16xf32> to vector<16xf32>
    %251 = vector.shape_cast %250 : vector<16xf32> to vector<1x16xf32>
    %252 = tpu.concatenate %246, %251 in 0 : vector<1x16xf32>, vector<1x16xf32> -> vector<2x16xf32>
    %c0_93 = arith.constant 0 : index
    %c0_94 = arith.constant 0 : index
    %c0_95 = arith.constant 0 : index
    %253 = vector.load %arg9[%c0_93, %c0_94, %c0_95] : memref<1x2x16xf32, #tpu.memory_space<vmem>>, vector<1x2x16xf32>
    %254 = vector.shape_cast %253 : vector<1x2x16xf32> to vector<2x16xf32>
    %255 = vector.shape_cast %252 : vector<2x16xf32> to vector<1x2x16xf32>
    tpu.vector_store %arg9[%c0_93, %c0_94, %c0_95], %255 {strides = array<i32>} : memref<1x2x16xf32, #tpu.memory_space<vmem>>, vector<1x2x16xf32>,
    %c0_96 = arith.constant 0 : index
    %c0_97 = arith.constant 0 : index
    %c0_98 = arith.constant 0 : index
    %256 = vector.load %arg10[%c0_96, %c0_97, %c0_98] : memref<1x32x32xf32, #tpu.memory_space<vmem>>, vector<1x32x32xf32>
    %257 = vector.shape_cast %256 : vector<1x32x32xf32> to vector<32x32xf32>
    %258 = vector.shape_cast %234 : vector<32x32xf32> to vector<1x32x32xf32>
    tpu.vector_store %arg10[%c0_96, %c0_97, %c0_98], %258 {strides = array<i32>} : memref<1x32x32xf32, #tpu.memory_space<vmem>>, vector<1x32x32xf32>,
    return
  }
  func.func @transform_0(%arg0: i32) -> (i32, i32) {
    %c0_i32 = arith.constant 0 : i32
    %c0_i32_0 = arith.constant 0 : i32
    %c0_i32_1 = arith.constant 0 : i32
    return %c0_i32, %c0_i32_0 : i32, i32
  }
  func.func @transform_1(%arg0: i32) -> (i32, i32, i32) {
    %c0_i32 = arith.constant 0 : i32
    %c0_i32_0 = arith.constant 0 : i32
    %c0_i32_1 = arith.constant 0 : i32
    return %arg0, %c0_i32, %c0_i32_0 : i32, i32, i32
  }
  func.func @transform_2(%arg0: i32) -> (i32, i32, i32, i32) {
    %c0_i32 = arith.constant 0 : i32
    %c0_i32_0 = arith.constant 0 : i32
    %c0_i32_1 = arith.constant 0 : i32
    %c0_i32_2 = arith.constant 0 : i32
    return %arg0, %c0_i32, %c0_i32_0, %c0_i32_1 : i32, i32, i32, i32
  }
  func.func @transform_3(%arg0: i32) -> (i32, i32, i32, i32) {
    %c0_i32 = arith.constant 0 : i32
    %c0_i32_0 = arith.constant 0 : i32
    %c0_i32_1 = arith.constant 0 : i32
    %c0_i32_2 = arith.constant 0 : i32
    return %arg0, %c0_i32, %c0_i32_0, %c0_i32_1 : i32, i32, i32, i32
  }
  func.func @transform_4(%arg0: i32) -> (i32, i32, i32, i32) {
    %c0_i32 = arith.constant 0 : i32
    %c0_i32_0 = arith.constant 0 : i32
    %c0_i32_1 = arith.constant 0 : i32
    %c0_i32_2 = arith.constant 0 : i32
    return %arg0, %c0_i32, %c0_i32_0, %c0_i32_1 : i32, i32, i32, i32
  }
  func.func @transform_5(%arg0: i32) -> (i32, i32, i32, i32) {
    %c0_i32 = arith.constant 0 : i32
    %c0_i32_0 = arith.constant 0 : i32
    %c0_i32_1 = arith.constant 0 : i32
    %c0_i32_2 = arith.constant 0 : i32
    return %arg0, %c0_i32, %c0_i32_0, %c0_i32_1 : i32, i32, i32, i32
  }
  func.func @transform_6(%arg0: i32) -> (i32, i32, i32) {
    %c0_i32 = arith.constant 0 : i32
    %c0_i32_0 = arith.constant 0 : i32
    %c0_i32_1 = arith.constant 0 : i32
    return %arg0, %c0_i32, %c0_i32_0 : i32, i32, i32
  }
  func.func @transform_7(%arg0: i32) -> (i32, i32, i32) {
    %c0_i32 = arith.constant 0 : i32
    %c0_i32_0 = arith.constant 0 : i32
    %c0_i32_1 = arith.constant 0 : i32
    return %arg0, %c0_i32, %c0_i32_0 : i32, i32, i32
  }
  func.func @transform_8(%arg0: i32) -> (i32, i32, i32) {
    %c0_i32 = arith.constant 0 : i32
    %c0_i32_0 = arith.constant 0 : i32
    %c0_i32_1 = arith.constant 0 : i32
    return %arg0, %c0_i32, %c0_i32_0 : i32, i32, i32
  }
  func.func @transform_9(%arg0: i32) -> (i32, i32, i32) {
    %c0_i32 = arith.constant 0 : i32
    %c0_i32_0 = arith.constant 0 : i32
    %c0_i32_1 = arith.constant 0 : i32
    return %arg0, %c0_i32, %c0_i32_0 : i32, i32, i32
  }
}

</mosaic_0001>

<bundles_post_ra>
// kernel: neutral_atoms_mlp_forward.1
= control target key start
LH: loop header
LB: loop body
LE: loop exit
PB: predicated region body
PF: predicated region fallthrough
CT: control target
= control target key end

     0   :  { %s2284_s30 = smov 0   ;;  %s2675_s0 = inlined_call_operand.vmem [shape: bf16[32,4], index: 0, kind: input, shape index: {}]   ;;  %s2676_s1 = inlined_call_operand.vmem [shape: bf16[2,4,32], index: 1, kind: input, shape index: {}]   ;;  %s2677_s2 = inlined_call_operand.vmem [shape: bf16[2,2,32,128], index: 2, kind: input, shape index: {}]   ;;  %s2678_s3 = inlined_call_operand.vmem [shape: bf16[2,2,128,32], index: 3, kind: input, shape index: {}]   ;;  %s2679_s4 = inlined_call_operand.vmem [shape: bf16[2,2,32,16], index: 4, kind: input, shape index: {}]   ;;  %s2680_s5 = inlined_call_operand.vmem [shape: bf16[2,2,16,32], index: 5, kind: input, shape index: {}]   ;;  %s2681_s6 = inlined_call_operand.vmem [shape: f32[2,20,128], index: 6, kind: input, shape index: {}]   ;;  %s2682_s7 = inlined_call_operand.vmem [shape: f32[2,16,16], index: 7, kind: input, shape index: {}]   ;;  %s2683_s8 = inlined_call_operand.vmem [shape: f32[2,2,16], index: 8, kind: output, shape index: {0}]   ;;  %s2684_s9 = inlined_call_operand.vmem [shape: f32[2,32,32], index: 9, kind: output, shape index: {1}]  }
   0x1 LB: > { %s1929_s10 = sadd.s32 4294967295, %s2231_s30   ;;  %p1933_p0 = scmp.ge.s32.totalorder %s2231_s30, 1  ;;  %s2231_s30 = sphi %s2284_s30, %s20_s30  }
   0x2   : > { %p349_p1 = scmp.lt.s32.totalorder %s2231_s30, 3 }
   0x4   : > { %p350_p2 = pnand %p1933_p0, %p349_p1 }
   0x5   : > { %p418_p3 = scmp.lt.s32.totalorder (!%p350_p2), %s1929_s10, 1 }
   0x6   : > { %353 = sbr.rel (%p350_p2) target bundleno = 3508 (0xdb4), region = 52 }
   0xb   : > { %s2686_s10 = smov (!%p418_p3, %s1929_s10), 1  ;;  %vm488_vm0 = vcmask 1041408   ;;  %v2109_v2 = vld [vmem:[%s2675_s0] sm:$0xff]  ;;  %v2110_v3 = vld [vmem:[%s2675_s0 + $0x8] sm:$0xff]  ;;  %vm481_vm1 = vcmask 31744   ;;  %vm511_vm2 = vcmask 261120  }
   0xc   : > { %s1934_s11 = sshll.u32 %s2686_s10, 1  ;;  %s2140_s19 = smul.u32 24, %s2686_s10  ;;  %v2233_v18 = vmov 32.0  }
   0xd   : > { %s421_s14 = scalar_lea.vmem %s2676_s1, %s1934_s11  ;;  %2151 = vrcp.f32 %v2233_v18  ;;  %s2363_s23 = sshll.u32 %s2686_s10, 5 }
   0xe   : > { %v469_v0 = vld [vmem:[%s421_s14] sm:$0x3]  ;;  %s2310_s22 = scalar_lea.vmem %s2681_s6, %s2140_s19  ;;  %s2369_s26 = scalar_lea.vmem %s2677_s2, %s2363_s23 }
   0xf   : > { %v490_v1 = vsel %vm488_vm0, %v469_v0, 0  ;;  %v2313_v4 = vld [vmem:[%s2310_s22] sm:$0xff]  ;;  %s2104_s27 = sshll.u32 %s2686_s10, 7  ;;  %s2440_s15 = scalar_lea.vmem %s2679_s4, %s2363_s23 }
  0x10   : > { %499 = vmatpush.bf16.msra.mxu0 %v490_v1  ;;  %2137 = vmatpush.bf16.msra.mxu1 %v490_v1  ;;  %v470_v5 = vperm.slane %v2313_v4, 0  ;;  %s2384_s12 = scalar_lea.vmem %s2678_s3, %s2104_s27  ;;  %s2106_s16 = sshll.u32 %s2686_s10, 4 }
  0x11   : > { %s2460_s19 = scalar_lea.vmem %s2680_s5, %s2106_s16  ;;  %s451_s25 = scalar_lea.vmem %s2682_s7, %s2106_s16 }
  0x12   : > { %s455_s28 = scalar_lea.vmem %s2683_s8, %s1934_s11 }
  0x13   : > { %1957 = vmatmul.msk.bf16.vlgmr.msra.gmra.mxu0 %vm481_vm1, %v2109_v2  ;;  %1958 = vmatmul.msk.bf16.vlgmr.msra.gmra.mxu1 %vm481_vm1, %v2110_v3  ;;  %v2152_v19 = vpop.eup %2151 }
  0x14   : > { %v525_v20 = vmul.f32 32.0, %v2152_v19  ;;  %vm529_vm3 = vweird.f32 %v2152_v19 }
  0x16   : > { %v526_v21 = vsub.f32 1.0, %v525_v20 }
  0x18   : > { %v527_v22 = vmul.f32 %v2152_v19, %v526_v21 }
  0x1a   : > { %v528_v23 = vadd.f32 %v2152_v19, %v527_v22 }
  0x1c   : > { %v2332_v24 = vsel %vm529_vm3, %v2152_v19, %v528_v23 }
  0x90   : > { %v501_v6 = vpop.f32.mrf.mxu0  ;;  %v506_v7 = vpop.f32.mrf.mxu1 }
  0x91   : > { %v2316_v8 = vadd.f32 %v501_v6, %v470_v5  ;;  %v2318_v9 = vadd.f32 %v506_v7, %v470_v5 }
  0x93   : > { %v518_v10 = vsel %vm511_vm2, %v2318_v9, 0.0  ;;  %v512_v11 = vsel %vm511_vm2, %v2316_v8, 0.0 }
  0x94   : > { %519 = vadd.xlane.f32.xlu1 %v518_v10  ;;  %513 = vadd.xlane.f32.xlu0 %v512_v11  ;;  %v607_v10 = vperm.slane %v2313_v4, 1 }
  0x98   : > { %v503_v12 = vpop.f32.mrf.mxu0  ;;  %v508_v13 = vpop.f32.mrf.mxu1 }
  0x99   : > { %v2324_v14 = vadd.f32 %v503_v12, %v470_v5  ;;  %v2326_v15 = vadd.f32 %v508_v13, %v470_v5  ;;  %v2112_v12 = vld [vmem:[%s2369_s26 + $0x8] sm:$0xff] }
  0x9a   : > { %680 = vmatpush.bf16.msrb.mxu1 %v2112_v12 }
  0x9b   : > { %v521_v16 = vsel %vm511_vm2, %v2326_v15, 0.0  ;;  %v515_v17 = vsel %vm511_vm2, %v2324_v14, 0.0 }
  0x9c   : > { %522 = vadd.xlane.f32.xlu1 %v521_v16  ;;  %516 = vadd.xlane.f32.xlu0 %v515_v17  ;;  %v612_v17 = vperm.slane %v2313_v4, 2 }
 0x107   : > { %v520_v25 = vpop.xlane.xlu1 %519  ;;  %v514_v26 = vpop.xlane.xlu0 %513 }
 0x108   : > { %v533_v27 = vmul.f32 %v2332_v24, %v520_v25  ;;  %v531_v28 = vmul.f32 %v2332_v24, %v514_v26 }
 0x10a   : > { %v2337_v29 = vsub.f32 %v2318_v9, %v533_v27  ;;  %v535_v30 = vsub.f32 %v2316_v8, %v531_v28 }
 0x10c   : > { %v541_v31 = vmul.f32 %v2337_v29, %v2337_v29  ;;  %v539_v32 = vmul.f32 %v535_v30, %v535_v30 }
 0x10e   : > { %v549_v33 = vsel %vm511_vm2, %v541_v31, 0.0  ;;  %v543_v34 = vsel %vm511_vm2, %v539_v32, 0.0 }
 0x10f   : > { %v523_v35 = vpop.xlane.xlu1 %522  ;;  %550 = vadd.xlane.f32.xlu0 %v549_v33  ;;  %544 = vadd.xlane.f32.xlu2 %v543_v34  ;;  %v517_v36 = vpop.xlane.xlu0 %516 }
 0x110   : > { %v534_v37 = vmul.f32 %v2332_v24, %v523_v35  ;;  %v532_v38 = vmul.f32 %v2332_v24, %v517_v36 }
 0x112   : > { %v2347_v39 = vsub.f32 %v2326_v15, %v534_v37  ;;  %v2350_v40 = vsub.f32 %v2324_v14, %v532_v38 }
 0x114   : > { %v542_v41 = vmul.f32 %v2347_v39, %v2347_v39  ;;  %v540_v42 = vmul.f32 %v2350_v40, %v2350_v40 }
 0x116   : > { %v552_v43 = vsel %vm511_vm2, %v542_v41, 0.0  ;;  %v546_v44 = vsel %vm511_vm2, %v540_v42, 0.0 }
 0x117   : > { %553 = vadd.xlane.f32.xlu1 %v552_v43  ;;  %547 = vadd.xlane.f32.xlu2 %v546_v44  ;;  %v2111_v44 = vld [vmem:[%s2369_s26] sm:$0xff] }
 0x118   : > { %681 = vmatpush.bf16.msrb.mxu1 %v2111_v44 }
 0x182   : > { %v545_v45 = vpop.xlane.xlu2 %544  ;;  %v551_v46 = vpop.xlane.xlu0 %550 }
 0x183   : > { %v555_v47 = vmul.f32 %v545_v45, %v2332_v24  ;;  %v557_v48 = vmul.f32 %v551_v46, %v2332_v24 }
 0x185   : > { %v559_v49 = vadd.f32 1e-05, %v555_v47  ;;  %v561_v50 = vadd.f32 1e-05, %v557_v48 }
 0x187   : > { %2153 = vrsqrt.f32 %v559_v49  ;;  %vm569_vm5 = vweird.f32 %v559_v49  ;;  %vm589_vm11 = vweird.f32 %v561_v50 }
 0x188   : > { %2155 = vrsqrt.f32 %v561_v50 }
 0x18a   : > { %v554_v51 = vpop.xlane.xlu1 %553  ;;  %v548_v52 = vpop.xlane.xlu2 %547 }
 0x18b   : > { %v558_v53 = vmul.f32 %v554_v51, %v2332_v24  ;;  %v556_v54 = vmul.f32 %v548_v52, %v2332_v24  ;;  %v2118_v51 = vld [vmem:[%s2384_s12 + $0x28] sm:$0xff]  ;;  %v2117_v52 = vld [vmem:[%s2384_s12 + $0x20] sm:$0xff] }
 0x18d   : > { %v2154_v55 = vpop.eup %2153  ;;  %v562_v56 = vadd.f32 1e-05, %v558_v53  ;;  %v560_v57 = vadd.f32 1e-05, %v556_v54  ;;  %v2116_v53 = vld [vmem:[%s2384_s12 + $0x18] sm:$0xff]  ;;  %v2115_v54 = vld [vmem:[%s2384_s12 + $0x10] sm:$0xff] }
 0x18e   : > { %v2156_v58 = vpop.eup %2155  ;;  %v564_v59 = vmul.f32 %v2154_v55, %v559_v49  ;;  %vm570_vm4 = vweird.f32 %v2154_v55 }
 0x18f   : > { %v584_v60 = vmul.f32 %v2156_v58, %v561_v50  ;;  %2157 = vrsqrt.f32 %v562_v56  ;;  %vm571_vm6 = vmor %vm569_vm5, %vm570_vm4  ;;  %vm590_vm8 = vweird.f32 %v2156_v58  ;;  %vm579_vm9 = vweird.f32 %v560_v57  ;;  %v2119_v50 = vld [vmem:[%s2384_s12 + $0x30] sm:$0xff] }
 0x190   : > { %v565_v61 = vmul.f32 %v2154_v55, %v564_v59  ;;  %2159 = vrsqrt.f32 %v560_v57  ;;  %vm591_vm12 = vmor %vm589_vm11, %vm590_vm8  ;;  %vm599_vm14 = vweird.f32 %v562_v56 }
 0x191   : > { %v585_v63 = vmul.f32 %v2156_v58, %v584_v60 }
 0x192   : > { %v566_v62 = vmul.f32 0.5, %v565_v61 }
 0x193   : > { %v586_v5 = vmul.f32 0.5, %v585_v63 }
 0x194   : > { %v567_v0 = vsub.f32 1.5, %v566_v62 }
 0x195   : > { %v2158_v1 = vpop.eup %2157  ;;  %v587_v18 = vsub.f32 1.5, %v586_v5 }
 0x196   : > { %v2160_v2 = vpop.eup %2159  ;;  %v568_v3 = vmul.f32 %v2154_v55, %v567_v0  ;;  %v594_v6 = vmul.f32 %v2158_v1, %v562_v56  ;;  %vm600_vm13 = vweird.f32 %v2158_v1  ;;  %v2113_v56 = vld [vmem:[%s2384_s12] sm:$0xff] }
 0x197   : > { %v574_v7 = vmul.f32 %v2160_v2, %v560_v57  ;;  %vm580_vm7 = vweird.f32 %v2160_v2  ;;  %v588_v25 = vmul.f32 %v2156_v58, %v587_v18  ;;  %vm601_vm15 = vmor %vm599_vm14, %vm600_vm13  ;;  %v655_v57 = vperm.slane %v2313_v4, 3 }
 0x198   : > { %v572_v11 = vsel %vm571_vm6, %v2154_v55, %v568_v3  ;;  %v595_v19 = vmul.f32 %v2158_v1, %v594_v6  ;;  %vm581_vm10 = vmor %vm579_vm9, %vm580_vm7  ;;  %v2114_v55 = vld [vmem:[%s2384_s12 + $0x8] sm:$0xff]  ;;  %vm1040_vm13 = vcmask 130048  }
 0x199   : > { %v575_v13 = vmul.f32 %v2160_v2, %v574_v7  ;;  %v603_v16 = vmul.f32 %v572_v11, %v535_v30  ;;  %v592_v31 = vsel %vm591_vm12, %v2156_v58, %v588_v25 }
 0x19a   : > { %v596_v26 = vmul.f32 0.5, %v595_v19  ;;  %v605_v35 = vmul.f32 %v592_v31, %v2337_v29 }
 0x19b   : > { %v576_v20 = vmul.f32 0.5, %v575_v13  ;;  %v608_v21 = vmul.f32 %v607_v10, %v603_v16 }
 0x19c   : > { %v597_v32 = vsub.f32 1.5, %v596_v26  ;;  %v610_v37 = vmul.f32 %v607_v10, %v605_v35 }
 0x19d   : > { %v577_v22 = vsub.f32 1.5, %v576_v20  ;;  %v613_v23 = vadd.f32 %v612_v17, %v608_v21 }
 0x19e   : > { %v598_v36 = vmul.f32 %v2158_v1, %v597_v32  ;;  %v615_v41 = vadd.f32 %v612_v17, %v610_v37 }
 0x19f   : > { %v578_v27 = vmul.f32 %v2160_v2, %v577_v22  ;;  %617 = vxpose.xlu2.b32.start [1/4] (short) (narrow) %v613_v23, 32 }
 0x1a0   : > { %v602_v38 = vsel %vm601_vm15, %v2158_v1, %v598_v36 }
 0x1a1   : > { %v582_v28 = vsel %vm581_vm10, %v2160_v2, %v578_v27  ;;  %v606_v42 = vmul.f32 %v602_v38, %v2347_v39  ;;  %v2120_v39 = vld [vmem:[%s2384_s12 + $0x38] sm:$0xff] }
 0x1a2   : > { %v604_v30 = vmul.f32 %v582_v28, %v2350_v40  ;;  %796 = vmatpush.bf16.msra.mxu2 %v2120_v39 }
 0x1a3   : > { %v611_v40 = vmul.f32 %v607_v10, %v606_v42 }
 0x1a4   : > { %v609_v33 = vmul.f32 %v607_v10, %v604_v30 }
 0x1a5   : > { %v616_v43 = vadd.f32 %v612_v17, %v611_v40 }
 0x1a6   : > { %v614_v34 = vadd.f32 %v612_v17, %v609_v33  ;;  %797 = vmatpush.bf16.msra.mxu2 %v2119_v50 }
 0x1a8   : > { %618 = vxpose.xlu2.b32.cont [2/4] (short) (narrow) %v614_v34, 32 }
 0x1aa   : > { %798 = vmatpush.bf16.msra.mxu2 %v2118_v51 }
 0x1ae   : > { %799 = vmatpush.bf16.msra.mxu2 %v2117_v52 }
 0x1b0   : > { %619 = vxpose.xlu2.b32.cont [3/4] (short) (narrow) %v615_v41, 32 }
 0x1b2   : > { %800 = vmatpush.bf16.msra.mxu2 %v2116_v53 }
 0x1b6   : > { %801 = vmatpush.bf16.msra.mxu2 %v2115_v54 }
 0x1b8   : > { %620 = vxpose.xlu2.b32.end [4/4] (short) (narrow) %v616_v43, 32 }
 0x1ba   : > { %802 = vmatpush.bf16.msra.mxu2 %v2114_v55 }
 0x1be   : > { %803 = vmatpush.bf16.msra.mxu2 %v2113_v56 }
 0x239   : > { %v633_v45 = vpop.trf.xlu2 }
 0x241   : > { %v634_v46 = vpop.trf.xlu2 }
 0x242   : > { %v649_v29 = vpack.c.bf16 %v634_v46, %v633_v45 }
 0x244   : > { %1967 = vmatmul.msk.bf16.vlgmr.msrb.gmra.mxu1 %vm511_vm2, %v649_v29 }
 0x249   : > { %v635_v47 = vpop.trf.xlu2 }
 0x251   : > { %v636_v48 = vpop.trf.xlu2 }
 0x252   : > { %v650_v49 = vpack.c.bf16 %v636_v48, %v635_v47  ;;  %v747_v47 = vperm.slane %v2313_v4, 4 }
 0x254   : > { %1968 = vmatmul.msk.bf16.gmra.mxu1 %vm511_vm2, %v650_v49 }
 0x2c1   : > { %v683_v58 = vpop.f32.mrf.mxu1 }
 0x2c2   : > { %v684_v59 = vadd.f32 %v683_v58, %v655_v57 }
 0x2c4   : > { %v697_v60 = vmul.f32 0.044715, %v684_v59  ;;  %v693_v26 = vmul.f32 0.5, %v684_v59 }
 0x2c6   : > { %v701_v61 = vmul.f32 %v697_v60, %v684_v59 }
 0x2c8   : > { %v705_v62 = vmul.f32 %v701_v61, %v684_v59 }
 0x2c9   : > { %v685_v63 = vpop.f32.mrf.mxu1 }
 0x2ca   : > { %v686_v0 = vadd.f32 %v685_v63, %v655_v57  ;;  %v709_v1 = vadd.f32 %v705_v62, %v684_v59 }
 0x2cc   : > { %v698_v2 = vmul.f32 0.044715, %v686_v0  ;;  %v713_v5 = vmul.f32 0.7978846, %v709_v1  ;;  %v694_v27 = vmul.f32 0.5, %v686_v0 }
 0x2ce   : > { %v702_v3 = vmul.f32 %v698_v2, %v686_v0  ;;  %2161 = vtanh.f32 %v713_v5 }
 0x2d0   : > { %v706_v6 = vmul.f32 %v702_v3, %v686_v0 }
 0x2d1   : > { %v688_v7 = vpop.f32.mrf.mxu1 }
 0x2d2   : > { %v689_v10 = vadd.f32 %v688_v7, %v655_v57  ;;  %v710_v11 = vadd.f32 %v706_v6, %v686_v0 }
 0x2d4   : > { %v699_v12 = vmul.f32 0.044715, %v689_v10  ;;  %v714_v13 = vmul.f32 0.7978846, %v710_v11  ;;  %v2162_v17 = vpop.eup %2161  ;;  %v695_v40 = vmul.f32 0.5, %v689_v10 }
 0x2d5   : > { %v721_v22 = vadd.f32 1.0, %v2162_v17 }
 0x2d6   : > { %2163 = vtanh.f32 %v714_v13  ;;  %v703_v16 = vmul.f32 %v699_v12, %v689_v10 }
 0x2d7   : > { %v725_v32 = vmul.f32 %v721_v22, %v693_v26 }
 0x2d8   : > { %v707_v18 = vmul.f32 %v703_v16, %v689_v10 }
 0x2d9   : > { %v690_v19 = vpop.f32.mrf.mxu1 }
 0x2da   : > { %v691_v20 = vadd.f32 %v690_v19, %v655_v57  ;;  %v711_v21 = vadd.f32 %v707_v18, %v689_v10 }
 0x2dc   : > { %v2164_v23 = vpop.eup %2163  ;;  %v700_v25 = vmul.f32 0.044715, %v691_v20  ;;  %v715_v31 = vmul.f32 0.7978846, %v711_v21  ;;  %v696_v43 = vmul.f32 0.5, %v691_v20 }
 0x2dd   : > { %v722_v28 = vadd.f32 1.0, %v2164_v23 }
 0x2de   : > { %v704_v30 = vmul.f32 %v700_v25, %v691_v20  ;;  %2165 = vtanh.f32 %v715_v31  ;;  %v2122_v25 = vld [vmem:[%s2440_s15 + $0x8] sm:$0xff] }
 0x2df   : > { %v726_v33 = vmul.f32 %v722_v28, %v694_v27  ;;  %980 = vmatpush.bf16.msra.mxu3 %v2122_v25  ;;  %v2121_v28 = vld [vmem:[%s2440_s15] sm:$0xff] }
 0x2e0   : > { %v708_v34 = vmul.f32 %v704_v30, %v691_v20 }
 0x2e1   : > { %v729_v35 = vpack.c.bf16 %v726_v33, %v725_v32 }
 0x2e2   : > { %v712_v36 = vadd.f32 %v708_v34, %v691_v20 }
 0x2e3   : > { %804 = vmatmul.bf16.vlgmr.msra.gmra.mxu2 %v729_v35  ;;  %981 = vmatpush.bf16.msra.mxu3 %v2121_v28 }
 0x2e4   : > { %v716_v37 = vmul.f32 0.7978846, %v712_v36  ;;  %v2166_v38 = vpop.eup %2165 }
 0x2e5   : > { %v723_v41 = vadd.f32 1.0, %v2166_v38 }
 0x2e6   : > { %2167 = vtanh.f32 %v716_v37 }
 0x2e7   : > { %v727_v45 = vmul.f32 %v723_v41, %v695_v40 }
 0x2ec   : > { %v2168_v42 = vpop.eup %2167 }
 0x2ed   : > { %v724_v44 = vadd.f32 1.0, %v2168_v42 }
 0x2ef   : > { %v728_v46 = vmul.f32 %v724_v44, %v696_v43 }
 0x2f1   : > { %v730_v29 = vpack.c.bf16 %v728_v46, %v727_v45 }
 0x2f3   : > { %809 = vmatmul.bf16.gmra.mxu2 %v730_v29 }
 0x366   : > { %v805_v48 = vpop.f32.mrf.mxu2 }
 0x367   : > { %v806_v49 = vadd.f32 %v805_v48, %v747_v47 }
 0x369   : > { %815 = vxpose.xlu0.b32.start [1/4] (short) (narrow) %v806_v49, 32 }
 0x36e   : > { %v807_v39 = vpop.f32.mrf.mxu2 }
 0x36f   : > { %v808_v50 = vadd.f32 %v807_v39, %v747_v47 }
 0x371   : > { %816 = vxpose.xlu0.b32.cont [2/4] (short) (narrow) %v808_v50, 32 }
 0x376   : > { %v810_v51 = vpop.f32.mrf.mxu2 }
 0x377   : > { %v811_v52 = vadd.f32 %v810_v51, %v747_v47 }
 0x379   : > { %817 = vxpose.xlu0.b32.cont [3/4] (short) (narrow) %v811_v52, 32 }
 0x37e   : > { %v812_v53 = vpop.f32.mrf.mxu2 }
 0x37f   : > { %v813_v54 = vadd.f32 %v812_v53, %v747_v47  ;;  %v939_v53 = vperm.slane %v2313_v4, 5 }
 0x381   : > { %818 = vxpose.xlu0.b32.end [4/4] (short) (narrow) %v813_v54, 32 }
 0x40d   : > { %v831_v55 = vpop.trf.xlu0 }
 0x40e   : > { %v2397_v56 = vadd.f32 %v831_v55, %v2316_v8 }
 0x410   : > { %v851_v57 = vsel %vm511_vm2, %v2397_v56, 0.0 }
 0x411   : > { %852 = vadd.xlane.f32.xlu1 %v851_v57 }
 0x415   : > { %v832_v58 = vpop.trf.xlu0 }
 0x416   : > { %v2402_v59 = vadd.f32 %v832_v58, %v2324_v14 }
 0x418   : > { %v854_v60 = vsel %vm511_vm2, %v2402_v59, 0.0 }
 0x419   : > { %855 = vadd.xlane.f32.xlu1 %v854_v60 }
 0x41d   : > { %v833_v61 = vpop.trf.xlu0 }
 0x41e   : > { %v2407_v62 = vadd.f32 %v833_v61, %v2318_v9 }
 0x420   : > { %v857_v8 = vsel %vm511_vm2, %v2407_v62, 0.0 }
 0x421   : > { %858 = vadd.xlane.f32.xlu1 %v857_v8  ;;  %v944_v8 = vperm.slane %v2313_v4, 6 }
 0x425   : > { %v834_v63 = vpop.trf.xlu0 }
 0x426   : > { %v2412_v0 = vadd.f32 %v834_v63, %v2326_v15 }
 0x428   : > { %v860_v14 = vsel %vm511_vm2, %v2412_v0, 0.0 }
 0x429   : > { %861 = vadd.xlane.f32.xlu1 %v860_v14 }
 0x484   : > { %v853_v1 = vpop.xlane.xlu1 %852 }
 0x485   : > { %v863_v2 = vmul.f32 %v853_v1, %v2332_v24 }
 0x487   : > { %v867_v3 = vsub.f32 %v2397_v56, %v863_v2 }
 0x489   : > { %v871_v5 = vmul.f32 %v867_v3, %v867_v3 }
 0x48b   : > { %v875_v9 = vsel %vm511_vm2, %v871_v5, 0.0 }
 0x48c   : > { %v856_v6 = vpop.xlane.xlu1 %855  ;;  %876 = vadd.xlane.f32.xlu1 %v875_v9 }
 0x48d   : > { %v864_v7 = vmul.f32 %v856_v6, %v2332_v24 }
 0x48f   : > { %v868_v10 = vsub.f32 %v2402_v59, %v864_v7 }
 0x491   : > { %v872_v15 = vmul.f32 %v868_v10, %v868_v10 }
 0x493   : > { %v878_v11 = vsel %vm511_vm2, %v872_v15, 0.0 }
 0x494   : > { %v859_v12 = vpop.xlane.xlu1 %858  ;;  %879 = vadd.xlane.f32.xlu1 %v878_v11 }
 0x495   : > { %v865_v13 = vmul.f32 %v859_v12, %v2332_v24 }
 0x497   : > { %v2424_v16 = vsub.f32 %v2407_v62, %v865_v13 }
 0x499   : > { %v873_v17 = vmul.f32 %v2424_v16, %v2424_v16 }
 0x49b   : > { %v881_v18 = vsel %vm511_vm2, %v873_v17, 0.0 }
 0x49c   : > { %882 = vadd.xlane.f32.xlu1 %v881_v18  ;;  %v862_v19 = vpop.xlane.xlu1 %861 }
 0x49d   : > { %v866_v20 = vmul.f32 %v862_v19, %v2332_v24 }
 0x49f   : > { %v2431_v21 = vsub.f32 %v2412_v0, %v866_v20 }
 0x4a1   : > { %v874_v22 = vmul.f32 %v2431_v21, %v2431_v21 }
 0x4a3   : > { %v884_v23 = vsel %vm511_vm2, %v874_v22, 0.0 }
 0x4a4   : > { %885 = vadd.xlane.f32.xlu1 %v884_v23 }
 0x4ff   : > { %v877_v26 = vpop.xlane.xlu1 %876 }
 0x500   : > { %v887_v27 = vmul.f32 %v877_v26, %v2332_v24 }
 0x502   : > { %v891_v30 = vadd.f32 1e-05, %v887_v27  ;;  %v955_v27 = vperm.slane %v2313_v4, 7 }
 0x504   : > { %2169 = vrsqrt.f32 %v891_v30  ;;  %vm901_vm1 = vweird.f32 %v891_v30 }
 0x507   : > { %v880_v31 = vpop.xlane.xlu1 %879 }
 0x508   : > { %v888_v32 = vmul.f32 %v880_v31, %v2332_v24 }
 0x50a   : > { %v2170_v33 = vpop.eup %2169  ;;  %v892_v34 = vadd.f32 1e-05, %v888_v32 }
 0x50b   : > { %v896_v35 = vmul.f32 %v2170_v33, %v891_v30  ;;  %vm902_vm0 = vweird.f32 %v2170_v33 }
 0x50c   : > { %2171 = vrsqrt.f32 %v892_v34  ;;  %vm903_vm3 = vmor %vm901_vm1, %vm902_vm0  ;;  %vm911_vm5 = vweird.f32 %v892_v34 }
 0x50d   : > { %v897_v36 = vmul.f32 %v2170_v33, %v896_v35 }
 0x50f   : > { %v898_v37 = vmul.f32 0.5, %v897_v36  ;;  %v883_v38 = vpop.xlane.xlu1 %882 }
 0x510   : > { %v889_v41 = vmul.f32 %v883_v38, %v2332_v24 }
 0x511   : > { %v899_v42 = vsub.f32 1.5, %v898_v37 }
 0x512   : > { %v2172_v40 = vpop.eup %2171  ;;  %v893_v43 = vadd.f32 1e-05, %v889_v41 }
 0x513   : > { %v900_v44 = vmul.f32 %v2170_v33, %v899_v42  ;;  %v906_v45 = vmul.f32 %v2172_v40, %v892_v34  ;;  %vm912_vm4 = vweird.f32 %v2172_v40 }
 0x514   : > { %2173 = vrsqrt.f32 %v893_v43  ;;  %vm913_vm6 = vmor %vm911_vm5, %vm912_vm4  ;;  %vm921_vm8 = vweird.f32 %v893_v43 }
 0x515   : > { %v907_v46 = vmul.f32 %v2172_v40, %v906_v45  ;;  %v904_v29 = vsel %vm903_vm3, %v2170_v33, %v900_v44 }
 0x516   : > { %v935_v51 = vmul.f32 %v904_v29, %v867_v3 }
 0x517   : > { %v908_v47 = vmul.f32 0.5, %v907_v46  ;;  %v886_v48 = vpop.xlane.xlu1 %885 }
 0x518   : > { %v890_v49 = vmul.f32 %v886_v48, %v2332_v24  ;;  %v940_v61 = vmul.f32 %v939_v53, %v935_v51 }
 0x519   : > { %v909_v39 = vsub.f32 1.5, %v908_v47 }
 0x51a   : > { %v2174_v50 = vpop.eup %2173  ;;  %v894_v52 = vadd.f32 1e-05, %v890_v49  ;;  %v945_v5 = vadd.f32 %v944_v8, %v940_v61 }
 0x51b   : > { %v910_v54 = vmul.f32 %v2172_v40, %v909_v39  ;;  %v916_v55 = vmul.f32 %v2174_v50, %v893_v43  ;;  %vm922_vm7 = vweird.f32 %v2174_v50 }
 0x51c   : > { %2175 = vrsqrt.f32 %v894_v52  ;;  %vm923_vm9 = vmor %vm921_vm8, %vm922_vm7  ;;  %vm931_vm11 = vweird.f32 %v894_v52 }
 0x51d   : > { %v914_v57 = vsel %vm913_vm6, %v2172_v40, %v910_v54  ;;  %v917_v58 = vmul.f32 %v2174_v50, %v916_v55 }
 0x51e   : > { %v936_v60 = vmul.f32 %v914_v57, %v868_v10 }
 0x51f   : > { %v918_v63 = vmul.f32 0.5, %v917_v58 }
 0x520   : > { %v941_v14 = vmul.f32 %v939_v53, %v936_v60 }
 0x521   : > { %v919_v1 = vsub.f32 1.5, %v918_v63 }
 0x522   : > { %v2176_v2 = vpop.eup %2175  ;;  %v946_v3 = vadd.f32 %v944_v8, %v941_v14 }
 0x523   : > { %v920_v9 = vmul.f32 %v2174_v50, %v919_v1  ;;  %v926_v6 = vmul.f32 %v2176_v2, %v894_v52  ;;  %vm932_vm10 = vweird.f32 %v2176_v2 }
 0x524   : > { %v949_v7 = vpack.c.bf16 %v946_v3, %v945_v5  ;;  %vm933_vm12 = vmor %vm931_vm11, %vm932_vm10 }
 0x525   : > { %v927_v15 = vmul.f32 %v2176_v2, %v926_v6  ;;  %v924_v11 = vsel %vm923_vm9, %v2174_v50, %v920_v9 }
 0x526   : > { %2009 = vmatmul.msk.bf16.vlgmr.msra.gmra.mxu3 %vm511_vm2, %v949_v7  ;;  %v937_v13 = vmul.f32 %v924_v11, %v2424_v16  ;;  %v2123_v16 = vld [vmem:[%s2460_s19] sm:$0xff] }
 0x527   : > { %v928_v10 = vmul.f32 0.5, %v927_v15  ;;  %1054 = vmatpush.bf16.msrb.mxu0 %v2123_v16 }
 0x528   : > { %v942_v20 = vmul.f32 %v939_v53, %v937_v13 }
 0x529   : > { %v929_v12 = vsub.f32 1.5, %v928_v10  ;;  %v2467_v10 = vld [vmem:[%s2310_s22 + $0x8] sm:$0xff] }
 0x52a   : > { %v947_v23 = vadd.f32 %v944_v8, %v942_v20 }
 0x52b   : > { %v930_v17 = vmul.f32 %v2176_v2, %v929_v12  ;;  %v1033_v12 = vperm.slane %v2467_v10, 0 }
 0x52d   : > { %v934_v18 = vsel %vm933_vm12, %v2176_v2, %v930_v17 }
 0x52e   : > { %v938_v19 = vmul.f32 %v934_v18, %v2431_v21 }
 0x530   : > { %v943_v22 = vmul.f32 %v939_v53, %v938_v19 }
 0x532   : > { %v948_v25 = vadd.f32 %v944_v8, %v943_v22 }
 0x534   : > { %v950_v26 = vpack.c.bf16 %v948_v25, %v947_v23 }
 0x536   : > { %2010 = vmatmul.msk.bf16.gmra.mxu3 %vm511_vm2, %v950_v26 }
 0x5a9   : > { %v983_v21 = vpop.f32.mrf.mxu3 }
 0x5aa   : > { %v984_v28 = vadd.f32 %v983_v21, %v955_v27 }
 0x5ac   : > { %v997_v30 = vmul.f32 0.044715, %v984_v28  ;;  %v993_v52 = vmul.f32 0.5, %v984_v28 }
 0x5ae   : > { %v1001_v31 = vmul.f32 %v997_v30, %v984_v28 }
 0x5b0   : > { %v1005_v32 = vmul.f32 %v1001_v31, %v984_v28 }
 0x5b1   : > { %v985_v33 = vpop.f32.mrf.mxu3 }
 0x5b2   : > { %v1009_v34 = vadd.f32 %v1005_v32, %v984_v28  ;;  %v986_v35 = vadd.f32 %v985_v33, %v955_v27 }
 0x5b4   : > { %v998_v36 = vmul.f32 0.044715, %v986_v35  ;;  %v1013_v37 = vmul.f32 0.7978846, %v1009_v34  ;;  %v994_v53 = vmul.f32 0.5, %v986_v35 }
 0x5b6   : > { %v1002_v38 = vmul.f32 %v998_v36, %v986_v35  ;;  %2177 = vtanh.f32 %v1013_v37 }
 0x5b8   : > { %v1006_v41 = vmul.f32 %v1002_v38, %v986_v35 }
 0x5b9   : > { %v988_v42 = vpop.f32.mrf.mxu3 }
 0x5ba   : > { %v1010_v40 = vadd.f32 %v1006_v41, %v986_v35  ;;  %v989_v43 = vadd.f32 %v988_v42, %v955_v27 }
 0x5bc   : > { %v1014_v44 = vmul.f32 0.7978846, %v1010_v40  ;;  %v999_v45 = vmul.f32 0.044715, %v989_v43  ;;  %v2178_v4 = vpop.eup %2177  ;;  %v995_v3 = vmul.f32 0.5, %v989_v43 }
 0x5bd   : > { %v1021_v39 = vadd.f32 1.0, %v2178_v4 }
 0x5be   : > { %v1003_v46 = vmul.f32 %v999_v45, %v989_v43  ;;  %2179 = vtanh.f32 %v1014_v44 }
 0x5bf   : > { %v1025_v58 = vmul.f32 %v1021_v39, %v993_v52 }
 0x5c0   : > { %v1007_v29 = vmul.f32 %v1003_v46, %v989_v43 }
 0x5c1   : > { %v990_v47 = vpop.f32.mrf.mxu3 }
 0x5c2   : > { %v991_v48 = vadd.f32 %v990_v47, %v955_v27  ;;  %v1011_v49 = vadd.f32 %v1007_v29, %v989_v43 }
 0x5c4   : > { %v2180_v50 = vpop.eup %2179  ;;  %v1000_v51 = vmul.f32 0.044715, %v991_v48  ;;  %v1015_v57 = vmul.f32 0.7978846, %v1011_v49  ;;  %v996_v9 = vmul.f32 0.5, %v991_v48 }
 0x5c5   : > { %v1022_v54 = vadd.f32 1.0, %v2180_v50 }
 0x5c6   : > { %v1004_v55 = vmul.f32 %v1000_v51, %v991_v48  ;;  %2181 = vtanh.f32 %v1015_v57 }
 0x5c7   : > { %v1026_v60 = vmul.f32 %v1022_v54, %v994_v53 }
 0x5c8   : > { %v1008_v61 = vmul.f32 %v1004_v55, %v991_v48 }
 0x5c9   : > { %v1029_v8 = vpack.c.bf16 %v1026_v60, %v1025_v58 }
 0x5ca   : > { %v1012_v63 = vadd.f32 %v1008_v61, %v991_v48 }
 0x5cb   : > { %2015 = vmatmul.msk.bf16.vlgmr.msrb.gmra.mxu0 %vm1040_vm13, %v1029_v8 }
 0x5cc   : > { %v1016_v14 = vmul.f32 0.7978846, %v1012_v63  ;;  %v2182_v1 = vpop.eup %2181 }
 0x5cd   : > { %v1023_v2 = vadd.f32 1.0, %v2182_v1 }
 0x5ce   : > { %2183 = vtanh.f32 %v1016_v14 }
 0x5cf   : > { %v1027_v7 = vmul.f32 %v1023_v2, %v995_v3  ;;  %v1158_v2 = vperm.slane %v2467_v10, 1 }
 0x5d4   : > { %v2184_v5 = vpop.eup %2183 }
 0x5d5   : > { %v1024_v6 = vadd.f32 1.0, %v2184_v5  ;;  %v2125_v5 = vld [vmem:[%s2369_s26 + $0x18] sm:$0xff] }
 0x5d6   : > { %1232 = vmatpush.bf16.msra.mxu1 %v2125_v5 }
 0x5d7   : > { %v1028_v15 = vmul.f32 %v1024_v6, %v996_v9 }
 0x5d9   : > { %v1030_v11 = vpack.c.bf16 %v1028_v15, %v1027_v7  ;;  %v1163_v7 = vperm.slane %v2467_v10, 2  ;;  %v2124_v15 = vld [vmem:[%s2369_s26 + $0x10] sm:$0xff] }
 0x5da   : > { %1233 = vmatpush.bf16.msra.mxu1 %v2124_v15 }
 0x5db   : > { %2016 = vmatmul.msk.bf16.gmra.mxu0 %vm1040_vm13, %v1030_v11 }
 0x648   : > { %v1056_v13 = vpop.f32.mrf.mxu0 }
 0x649   : > { %v1057_v17 = vadd.f32 %v1056_v13, %v1033_v12 }
 0x64b   : > { %v2471_v18 = vadd.f32 %v1057_v17, %v2397_v56 }
 0x64d   : > { %v1070_v19 = vsel %vm511_vm2, %v2471_v18, 0.0 }
 0x64e   : > { %1071 = vadd.xlane.f32.xlu2 %v1070_v19 }
 0x650   : > { %v1058_v20 = vpop.f32.mrf.mxu0 }
 0x651   : > { %v1059_v22 = vadd.f32 %v1058_v20, %v1033_v12 }
 0x653   : > { %v2476_v23 = vadd.f32 %v1059_v22, %v2402_v59 }
 0x655   : > { %v1073_v25 = vsel %vm511_vm2, %v2476_v23, 0.0 }
 0x656   : > { %1074 = vadd.xlane.f32.xlu1 %v1073_v25 }
 0x658   : > { %v1061_v26 = vpop.f32.mrf.mxu0 }
 0x659   : > { %v1062_v16 = vadd.f32 %v1061_v26, %v1033_v12 }
 0x65b   : > { %v2481_v27 = vadd.f32 %v1062_v16, %v2407_v62 }
 0x65d   : > { %v1076_v56 = vsel %vm511_vm2, %v2481_v27, 0.0 }
 0x65e   : > { %1077 = vadd.xlane.f32.xlu0 %v1076_v56 }
 0x660   : > { %v1063_v21 = vpop.f32.mrf.mxu0 }
 0x661   : > { %v1064_v28 = vadd.f32 %v1063_v21, %v1033_v12 }
 0x663   : > { %v2486_v30 = vadd.f32 %v1064_v28, %v2412_v0 }
 0x665   : > { %v1079_v59 = vsel %vm511_vm2, %v2486_v30, 0.0 }
 0x666   : > { %1080 = vadd.xlane.f32.xlu1 %v1079_v59 }
 0x6c1   : > { %v1072_v31 = vpop.xlane.xlu2 %1071 }
 0x6c2   : > { %v1082_v32 = vmul.f32 %v1072_v31, %v2332_v24 }
 0x6c4   : > { %v1086_v33 = vsub.f32 %v2471_v18, %v1082_v32 }
 0x6c6   : > { %v1090_v62 = vmul.f32 %v1086_v33, %v1086_v33 }
 0x6c8   : > { %v1094_v34 = vsel %vm511_vm2, %v1090_v62, 0.0 }
 0x6c9   : > { %1095 = vadd.xlane.f32.xlu1 %v1094_v34  ;;  %v1075_v35 = vpop.xlane.xlu1 %1074 }
 0x6ca   : > { %v1083_v36 = vmul.f32 %v1075_v35, %v2332_v24 }
 0x6cc   : > { %v2495_v37 = vsub.f32 %v2476_v23, %v1083_v36 }
 0x6ce   : > { %v1091_v0 = vmul.f32 %v2495_v37, %v2495_v37 }
 0x6d0   : > { %v1097_v38 = vsel %vm511_vm2, %v1091_v0, 0.0 }
 0x6d1   : > { %v1078_v41 = vpop.xlane.xlu0 %1077  ;;  %1098 = vadd.xlane.f32.xlu1 %v1097_v38 }
 0x6d2   : > { %v1084_v42 = vmul.f32 %v1078_v41, %v2332_v24 }
 0x6d4   : > { %v2502_v40 = vsub.f32 %v2481_v27, %v1084_v42 }
 0x6d6   : > { %v1092_v43 = vmul.f32 %v2502_v40, %v2502_v40 }
 0x6d8   : > { %v1100_v44 = vsel %vm511_vm2, %v1092_v43, 0.0 }
 0x6d9   : > { %1101 = vadd.xlane.f32.xlu1 %v1100_v44  ;;  %v1081_v45 = vpop.xlane.xlu1 %1080 }
 0x6da   : > { %v1085_v46 = vmul.f32 %v1081_v45, %v2332_v24 }
 0x6dc   : > { %v2509_v4 = vsub.f32 %v2486_v30, %v1085_v46 }
 0x6de   : > { %v1093_v29 = vmul.f32 %v2509_v4, %v2509_v4 }
 0x6e0   : > { %v1103_v47 = vsel %vm511_vm2, %v1093_v29, 0.0 }
 0x6e1   : > { %1104 = vadd.xlane.f32.xlu1 %v1103_v47 }
 0x73c   : > { %v1096_v48 = vpop.xlane.xlu1 %1095 }
 0x73d   : > { %v1106_v49 = vmul.f32 %v1096_v48, %v2332_v24 }
 0x73f   : > { %v1110_v39 = vadd.f32 1e-05, %v1106_v49 }
 0x741   : > { %2185 = vrsqrt.f32 %v1110_v39  ;;  %vm1120_vm15 = vweird.f32 %v1110_v39 }
 0x744   : > { %v1099_v50 = vpop.xlane.xlu1 %1098 }
 0x745   : > { %v1107_v51 = vmul.f32 %v1099_v50, %v2332_v24 }
 0x747   : > { %v2186_v52 = vpop.eup %2185  ;;  %v1111_v53 = vadd.f32 1e-05, %v1107_v51 }
 0x748   : > { %v1115_v54 = vmul.f32 %v2186_v52, %v1110_v39  ;;  %vm1121_vm14 = vweird.f32 %v2186_v52 }
 0x749   : > { %2187 = vrsqrt.f32 %v1111_v53  ;;  %vm1122_vm0 = vmor %vm1120_vm15, %vm1121_vm14  ;;  %vm1130_vm3 = vweird.f32 %v1111_v53 }
 0x74a   : > { %v1116_v55 = vmul.f32 %v2186_v52, %v1115_v54  ;;  %v2130_v54 = vld [vmem:[%s2384_s12 + $0x60] sm:$0xff] }
 0x74c   : > { %v1117_v57 = vmul.f32 0.5, %v1116_v55  ;;  %v1102_v58 = vpop.xlane.xlu1 %1101  ;;  %v2129_v55 = vld [vmem:[%s2384_s12 + $0x58] sm:$0xff] }
 0x74d   : > { %v1108_v60 = vmul.f32 %v1102_v58, %v2332_v24  ;;  %v2127_v58 = vld [vmem:[%s2384_s12 + $0x48] sm:$0xff] }
 0x74e   : > { %v1118_v61 = vsub.f32 1.5, %v1117_v57  ;;  %v2128_v57 = vld [vmem:[%s2384_s12 + $0x50] sm:$0xff] }
 0x74f   : > { %v2188_v8 = vpop.eup %2187  ;;  %v1112_v63 = vadd.f32 1e-05, %v1108_v60  ;;  %v2126_v60 = vld [vmem:[%s2384_s12 + $0x40] sm:$0xff] }
 0x750   : > { %v1119_v14 = vmul.f32 %v2186_v52, %v1118_v61  ;;  %v1125_v1 = vmul.f32 %v2188_v8, %v1111_v53  ;;  %vm1131_vm1 = vweird.f32 %v2188_v8  ;;  %v2131_v53 = vld [vmem:[%s2384_s12 + $0x68] sm:$0xff]  ;;  %v1207_v61 = vperm.slane %v2467_v10, 3 }
 0x751   : > { %2189 = vrsqrt.f32 %v1112_v63  ;;  %vm1132_vm4 = vmor %vm1130_vm3, %vm1131_vm1  ;;  %vm1140_vm6 = vweird.f32 %v1112_v63 }
 0x752   : > { %v1126_v3 = vmul.f32 %v2188_v8, %v1125_v1  ;;  %v1123_v9 = vsel %vm1122_vm0, %v2186_v52, %v1119_v14  ;;  %v2132_v52 = vld [vmem:[%s2384_s12 + $0x70] sm:$0xff] }
 0x753   : > { %v1154_v6 = vmul.f32 %v1123_v9, %v1086_v33 }
 0x754   : > { %v1127_v11 = vmul.f32 0.5, %v1126_v3  ;;  %v1105_v12 = vpop.xlane.xlu1 %1104 }
 0x755   : > { %v1109_v13 = vmul.f32 %v1105_v12, %v2332_v24  ;;  %v1159_v17 = vmul.f32 %v1158_v2, %v1154_v6 }
 0x756   : > { %v1128_v19 = vsub.f32 1.5, %v1127_v11 }
 0x757   : > { %v2190_v20 = vpop.eup %2189  ;;  %v1113_v22 = vadd.f32 1e-05, %v1109_v13  ;;  %v1164_v25 = vadd.f32 %v1163_v7, %v1159_v17 }
 0x758   : > { %v1129_v26 = vmul.f32 %v2188_v8, %v1128_v19  ;;  %v1135_v16 = vmul.f32 %v2190_v20, %v1112_v63  ;;  %vm1141_vm5 = vweird.f32 %v2190_v20 }
 0x759   : > { %2191 = vrsqrt.f32 %v1113_v22  ;;  %1168 = vxpose.xlu1.b32.start [1/4] (short) (narrow) %v1164_v25, 32  ;;  %vm1142_vm7 = vmor %vm1140_vm6, %vm1141_vm5  ;;  %vm1150_vm9 = vweird.f32 %v1113_v22 }
 0x75a   : > { %v1133_v56 = vsel %vm1132_vm4, %v2188_v8, %v1129_v26  ;;  %v1136_v21 = vmul.f32 %v2190_v20, %v1135_v16 }
 0x75b   : > { %v1155_v28 = vmul.f32 %v1133_v56, %v2495_v37 }
 0x75c   : > { %v1137_v59 = vmul.f32 0.5, %v1136_v21 }
 0x75d   : > { %v1160_v31 = vmul.f32 %v1158_v2, %v1155_v28 }
 0x75e   : > { %v1138_v32 = vsub.f32 1.5, %v1137_v59 }
 0x75f   : > { %v2192_v33 = vpop.eup %2191  ;;  %v1165_v62 = vadd.f32 %v1163_v7, %v1160_v31 }
 0x760   : > { %v1139_v34 = vmul.f32 %v2190_v20, %v1138_v32  ;;  %v1145_v35 = vmul.f32 %v2192_v33, %v1113_v22  ;;  %vm1151_vm8 = vweird.f32 %v2192_v33 }
 0x761   : > { %1169 = vxpose.xlu1.b32.cont [2/4] (short) (narrow) %v1165_v62, 32  ;;  %vm1152_vm10 = vmor %vm1150_vm9, %vm1151_vm8 }
 0x762   : > { %v1143_v36 = vsel %vm1142_vm7, %v2190_v20, %v1139_v34  ;;  %v1146_v0 = vmul.f32 %v2192_v33, %v1145_v35 }
 0x763   : > { %v1156_v38 = vmul.f32 %v1143_v36, %v2502_v40 }
 0x764   : > { %v1147_v41 = vmul.f32 0.5, %v1146_v0 }
 0x765   : > { %v1161_v42 = vmul.f32 %v1158_v2, %v1156_v38 }
 0x766   : > { %v1148_v43 = vsub.f32 1.5, %v1147_v41 }
 0x767   : > { %v1166_v37 = vadd.f32 %v1163_v7, %v1161_v42 }
 0x768   : > { %v1149_v44 = vmul.f32 %v2192_v33, %v1148_v43 }
 0x769   : > { %1170 = vxpose.xlu1.b32.cont [3/4] (short) (narrow) %v1166_v37, 32 }
 0x76a   : > { %v1153_v45 = vsel %vm1152_vm10, %v2192_v33, %v1149_v44 }
 0x76b   : > { %v1157_v46 = vmul.f32 %v1153_v45, %v2509_v4  ;;  %v2133_v4 = vld [vmem:[%s2384_s12 + $0x78] sm:$0xff] }
 0x76c   : > { %1349 = vmatpush.bf16.msrb.mxu3 %v2133_v4 }
 0x76d   : > { %v1162_v29 = vmul.f32 %v1158_v2, %v1157_v46 }
 0x76f   : > { %v1167_v47 = vadd.f32 %v1163_v7, %v1162_v29 }
 0x770   : > { %1350 = vmatpush.bf16.msrb.mxu3 %v2132_v52 }
 0x771   : > { %1171 = vxpose.xlu1.b32.end [4/4] (short) (narrow) %v1167_v47, 32 }
 0x774   : > { %1351 = vmatpush.bf16.msrb.mxu3 %v2131_v53 }
 0x778   : > { %1352 = vmatpush.bf16.msrb.mxu3 %v2130_v54 }
 0x77c   : > { %1353 = vmatpush.bf16.msrb.mxu3 %v2129_v55 }
 0x780   : > { %1354 = vmatpush.bf16.msrb.mxu3 %v2128_v57 }
 0x784   : > { %1355 = vmatpush.bf16.msrb.mxu3 %v2127_v58 }
 0x788   : > { %1356 = vmatpush.bf16.msrb.mxu3 %v2126_v60 }
 0x7fd   : > { %v1184_v40 = vpop.trf.xlu1 }
 0x805   : > { %v1185_v48 = vpop.trf.xlu1 }
 0x806   : > { %v1200_v49 = vpack.c.bf16 %v1185_v48, %v1184_v40 }
 0x808   : > { %2029 = vmatmul.msk.bf16.vlgmr.msra.gmra.mxu1 %vm511_vm2, %v1200_v49 }
 0x80d   : > { %v1186_v39 = vpop.trf.xlu1 }
 0x815   : > { %v1187_v50 = vpop.trf.xlu1 }
 0x816   : > { %v1201_v51 = vpack.c.bf16 %v1187_v50, %v1186_v39  ;;  %v1300_v39 = vperm.slane %v2467_v10, 4 }
 0x818   : > { %2030 = vmatmul.msk.bf16.gmra.mxu1 %vm511_vm2, %v1201_v51 }
 0x885   : > { %v1235_v8 = vpop.f32.mrf.mxu1 }
 0x886   : > { %v1236_v63 = vadd.f32 %v1235_v8, %v1207_v61 }
 0x888   : > { %v1249_v14 = vmul.f32 0.044715, %v1236_v63  ;;  %v1245_v32 = vmul.f32 0.5, %v1236_v63 }
 0x88a   : > { %v1253_v1 = vmul.f32 %v1249_v14, %v1236_v63 }
 0x88c   : > { %v1257_v2 = vmul.f32 %v1253_v1, %v1236_v63 }
 0x88d   : > { %v1237_v5 = vpop.f32.mrf.mxu1 }
 0x88e   : > { %v1238_v3 = vadd.f32 %v1237_v5, %v1207_v61  ;;  %v1261_v9 = vadd.f32 %v1257_v2, %v1236_v63 }
 0x890   : > { %v1250_v6 = vmul.f32 0.044715, %v1238_v3  ;;  %v1265_v15 = vmul.f32 0.7978846, %v1261_v9  ;;  %v1246_v33 = vmul.f32 0.5, %v1238_v3 }
 0x892   : > { %v1254_v7 = vmul.f32 %v1250_v6, %v1238_v3  ;;  %2193 = vtanh.f32 %v1265_v15 }
 0x894   : > { %v1258_v11 = vmul.f32 %v1254_v7, %v1238_v3 }
 0x895   : > { %v1240_v12 = vpop.f32.mrf.mxu1 }
 0x896   : > { %v1241_v13 = vadd.f32 %v1240_v12, %v1207_v61  ;;  %v1262_v17 = vadd.f32 %v1258_v11, %v1238_v3 }
 0x898   : > { %v1251_v19 = vmul.f32 0.044715, %v1241_v13  ;;  %v1266_v20 = vmul.f32 0.7978846, %v1262_v17  ;;  %v2194_v25 = vpop.eup %2193  ;;  %v1247_v46 = vmul.f32 0.5, %v1241_v13 }
 0x899   : > { %v1273_v28 = vadd.f32 1.0, %v2194_v25 }
 0x89a   : > { %2195 = vtanh.f32 %v1266_v20  ;;  %v1255_v22 = vmul.f32 %v1251_v19, %v1241_v13 }
 0x89b   : > { %v1277_v36 = vmul.f32 %v1273_v28, %v1245_v32 }
 0x89c   : > { %v1259_v26 = vmul.f32 %v1255_v22, %v1241_v13 }
 0x89d   : > { %v1242_v16 = vpop.f32.mrf.mxu1 }
 0x89e   : > { %v1243_v56 = vadd.f32 %v1242_v16, %v1207_v61  ;;  %v1263_v21 = vadd.f32 %v1259_v26, %v1241_v13 }
 0x8a0   : > { %v2196_v59 = vpop.eup %2195  ;;  %v1252_v31 = vmul.f32 0.044715, %v1243_v56  ;;  %v1267_v35 = vmul.f32 0.7978846, %v1263_v21  ;;  %v1248_v29 = vmul.f32 0.5, %v1243_v56 }
 0x8a1   : > { %v1274_v62 = vadd.f32 1.0, %v2196_v59 }
 0x8a2   : > { %v1256_v34 = vmul.f32 %v1252_v31, %v1243_v56  ;;  %2197 = vtanh.f32 %v1267_v35  ;;  %v2135_v31 = vld [vmem:[%s2440_s15 + $0x18] sm:$0xff] }
 0x8a3   : > { %v1278_v0 = vmul.f32 %v1274_v62, %v1246_v33  ;;  %1534 = vmatpush.bf16.msrb.mxu2 %v2135_v31  ;;  %2138 = vmatpush.bf16.msra.mxu3 %v2135_v31  ;;  %v2134_v62 = vld [vmem:[%s2440_s15 + $0x10] sm:$0xff] }
 0x8a4   : > { %v1260_v38 = vmul.f32 %v1256_v34, %v1243_v56 }
 0x8a5   : > { %v1281_v41 = vpack.c.bf16 %v1278_v0, %v1277_v36 }
 0x8a6   : > { %v1264_v42 = vadd.f32 %v1260_v38, %v1243_v56 }
 0x8a7   : > { %1357 = vmatmul.bf16.vlgmr.msrb.gmra.mxu3 %v1281_v41  ;;  %1535 = vmatpush.bf16.msrb.mxu2 %v2134_v62 }
 0x8a8   : > { %v1268_v43 = vmul.f32 0.7978846, %v1264_v42  ;;  %v2198_v37 = vpop.eup %2197  ;;  %2139 = vmatpush.bf16.msra.mxu3 %v2134_v62  ;;  %v1509_v62 = vperm.slane %v2467_v10, 7 }
 0x8a9   : > { %v1275_v44 = vadd.f32 1.0, %v2198_v37 }
 0x8aa   : > { %2199 = vtanh.f32 %v1268_v43 }
 0x8ab   : > { %v1279_v40 = vmul.f32 %v1275_v44, %v1247_v46 }
 0x8b0   : > { %v2200_v45 = vpop.eup %2199 }
 0x8b1   : > { %v1276_v47 = vadd.f32 1.0, %v2200_v45 }
 0x8b3   : > { %v1280_v48 = vmul.f32 %v1276_v47, %v1248_v29 }
 0x8b5   : > { %v1282_v49 = vpack.c.bf16 %v1280_v48, %v1279_v40 }
 0x8b7   : > { %1362 = vmatmul.bf16.gmra.mxu3 %v1282_v49 }
 0x92a   : > { %v1358_v50 = vpop.f32.mrf.mxu3 }
 0x92b   : > { %v1359_v51 = vadd.f32 %v1358_v50, %v1300_v39 }
 0x92d   : > { %1368 = vxpose.xlu2.b32.start [1/4] (short) (narrow) %v1359_v51, 32 }
 0x932   : > { %v1360_v4 = vpop.f32.mrf.mxu3 }
 0x933   : > { %v1361_v52 = vadd.f32 %v1360_v4, %v1300_v39 }
 0x935   : > { %1369 = vxpose.xlu2.b32.cont [2/4] (short) (narrow) %v1361_v52, 32 }
 0x93a   : > { %v1363_v53 = vpop.f32.mrf.mxu3 }
 0x93b   : > { %v1364_v54 = vadd.f32 %v1363_v53, %v1300_v39 }
 0x93d   : > { %1370 = vxpose.xlu2.b32.cont [3/4] (short) (narrow) %v1364_v54, 32  ;;  %v1492_v54 = vperm.slane %v2467_v10, 5 }
 0x942   : > { %v1365_v55 = vpop.f32.mrf.mxu3 }
 0x943   : > { %v1366_v57 = vadd.f32 %v1365_v55, %v1300_v39 }
 0x945   : > { %1371 = vxpose.xlu2.b32.end [4/4] (short) (narrow) %v1366_v57, 32 }
 0x9c6   : > { %v1384_v58 = vpop.trf.xlu2 }
 0x9c7   : > { %v2538_v60 = vadd.f32 %v1384_v58, %v2471_v18 }
 0x9c9   : > { %v1404_v61 = vsel %vm511_vm2, %v2538_v60, 0.0 }
 0x9ca   : > { %1405 = vadd.xlane.f32.xlu0 %v1404_v61 }
 0x9ce   : > { %v1385_v8 = vpop.trf.xlu2 }
 0x9cf   : > { %v2543_v63 = vadd.f32 %v1385_v8, %v2476_v23 }
 0x9d1   : > { %v1407_v14 = vsel %vm511_vm2, %v2543_v63, 0.0 }
 0x9d2   : > { %1408 = vadd.xlane.f32.xlu0 %v1407_v14 }
 0x9d6   : > { %v1386_v1 = vpop.trf.xlu2 }
 0x9d7   : > { %v2548_v2 = vadd.f32 %v1386_v1, %v2481_v27  ;;  %v1497_v1 = vperm.slane %v2467_v10, 6 }
 0x9d9   : > { %v1410_v18 = vsel %vm511_vm2, %v2548_v2, 0.0 }
 0x9da   : > { %1411 = vadd.xlane.f32.xlu0 %v1410_v18 }
 0x9de   : > { %v1387_v5 = vpop.trf.xlu2 }
 0x9df   : > { %v2553_v3 = vadd.f32 %v1387_v5, %v2486_v30 }
 0x9e1   : > { %v1413_v23 = vsel %vm511_vm2, %v2553_v3, 0.0 }
 0x9e2   : > { %1414 = vadd.xlane.f32.xlu1 %v1413_v23 }
 0xa3d   : > { %v1406_v9 = vpop.xlane.xlu0 %1405 }
 0xa3e   : > { %v1416_v6 = vmul.f32 %v1406_v9, %v2332_v24 }
 0xa40   : > { %v1420_v7 = vsub.f32 %v2538_v60, %v1416_v6 }
 0xa42   : > { %v1424_v15 = vmul.f32 %v1420_v7, %v1420_v7 }
 0xa44   : > { %v1428_v27 = vsel %vm511_vm2, %v1424_v15, 0.0 }
 0xa45   : > { %v1409_v11 = vpop.xlane.xlu0 %1408  ;;  %1429 = vadd.xlane.f32.xlu0 %v1428_v27 }
 0xa46   : > { %v1417_v12 = vmul.f32 %v1409_v11, %v2332_v24 }
 0xa48   : > { %v2562_v13 = vsub.f32 %v2543_v63, %v1417_v12 }
 0xa4a   : > { %v1425_v30 = vmul.f32 %v2562_v13, %v2562_v13 }
 0xa4c   : > { %v1431_v17 = vsel %vm511_vm2, %v1425_v30, 0.0 }
 0xa4d   : > { %1432 = vadd.xlane.f32.xlu0 %v1431_v17  ;;  %v1412_v19 = vpop.xlane.xlu0 %1411 }
 0xa4e   : > { %v1418_v20 = vmul.f32 %v1412_v19, %v2332_v24 }
 0xa50   : > { %v2569_v22 = vsub.f32 %v2548_v2, %v1418_v20 }
 0xa52   : > { %v1426_v25 = vmul.f32 %v2569_v22, %v2569_v22 }
 0xa54   : > { %v1434_v26 = vsel %vm511_vm2, %v1426_v25, 0.0 }
 0xa55   : > { %1435 = vadd.xlane.f32.xlu0 %v1434_v26  ;;  %v1415_v16 = vpop.xlane.xlu1 %1414 }
 0xa56   : > { %v1419_v56 = vmul.f32 %v1415_v16, %v2332_v24 }
 0xa58   : > { %v2576_v21 = vsub.f32 %v2553_v3, %v1419_v56 }
 0xa5a   : > { %v1427_v28 = vmul.f32 %v2576_v21, %v2576_v21 }
 0xa5c   : > { %v1437_v59 = vsel %vm511_vm2, %v1427_v28, 0.0 }
 0xa5d   : > { %1438 = vadd.xlane.f32.xlu0 %v1437_v59 }
 0xab8   : > { %v1430_v32 = vpop.xlane.xlu0 %1429 }
 0xab9   : > { %v1440_v33 = vmul.f32 %v1430_v32, %v2332_v24 }
 0xabb   : > { %v1444_v34 = vadd.f32 1e-05, %v1440_v33  ;;  %v2136_v33 = vld [vmem:[%s2460_s19 + $0x8] sm:$0xff] }
 0xabc   : > { %1608 = vmatpush.bf16.msra.mxu0 %v2136_v33 }
 0xabd   : > { %2201 = vrsqrt.f32 %v1444_v34  ;;  %vm1454_vm12 = vweird.f32 %v1444_v34 }
 0xac0   : > { %v1433_v35 = vpop.xlane.xlu0 %1432 }
 0xac1   : > { %v1441_v36 = vmul.f32 %v1433_v35, %v2332_v24 }
 0xac3   : > { %v2202_v0 = vpop.eup %2201  ;;  %v1445_v38 = vadd.f32 1e-05, %v1441_v36 }
 0xac4   : > { %v1449_v41 = vmul.f32 %v2202_v0, %v1444_v34  ;;  %vm1455_vm11 = vweird.f32 %v2202_v0 }
 0xac5   : > { %2203 = vrsqrt.f32 %v1445_v38  ;;  %vm1456_vm14 = vmor %vm1454_vm12, %vm1455_vm11  ;;  %vm1464_vm0 = vweird.f32 %v1445_v38 }
 0xac6   : > { %v1450_v42 = vmul.f32 %v2202_v0, %v1449_v41 }
 0xac8   : > { %v1451_v43 = vmul.f32 0.5, %v1450_v42  ;;  %v1436_v37 = vpop.xlane.xlu0 %1435 }
 0xac9   : > { %v1442_v44 = vmul.f32 %v1436_v37, %v2332_v24 }
 0xaca   : > { %v1452_v45 = vsub.f32 1.5, %v1451_v43 }
 0xacb   : > { %v2204_v46 = vpop.eup %2203  ;;  %v1446_v29 = vadd.f32 1e-05, %v1442_v44 }
 0xacc   : > { %v1453_v47 = vmul.f32 %v2202_v0, %v1452_v45  ;;  %v1459_v40 = vmul.f32 %v2204_v46, %v1445_v38  ;;  %vm1465_vm15 = vweird.f32 %v2204_v46 }
 0xacd   : > { %2205 = vrsqrt.f32 %v1446_v29  ;;  %vm1466_vm1 = vmor %vm1464_vm0, %vm1465_vm15  ;;  %vm1474_vm4 = vweird.f32 %v1446_v29 }
 0xace   : > { %v1460_v48 = vmul.f32 %v2204_v46, %v1459_v40  ;;  %v1457_v49 = vsel %vm1456_vm14, %v2202_v0, %v1453_v47 }
 0xacf   : > { %v1488_v53 = vmul.f32 %v1457_v49, %v1420_v7 }
 0xad0   : > { %v1461_v39 = vmul.f32 0.5, %v1460_v48  ;;  %v1439_v50 = vpop.xlane.xlu0 %1438 }
 0xad1   : > { %v1443_v51 = vmul.f32 %v1439_v50, %v2332_v24  ;;  %v1493_v18 = vmul.f32 %v1492_v54, %v1488_v53 }
 0xad2   : > { %v1462_v4 = vsub.f32 1.5, %v1461_v39 }
 0xad3   : > { %v2206_v52 = vpop.eup %2205  ;;  %v1447_v55 = vadd.f32 1e-05, %v1443_v51  ;;  %v1498_v7 = vadd.f32 %v1497_v1, %v1493_v18 }
 0xad4   : > { %v1463_v57 = vmul.f32 %v2204_v46, %v1462_v4  ;;  %v1469_v58 = vmul.f32 %v2206_v52, %v1446_v29  ;;  %vm1475_vm3 = vweird.f32 %v2206_v52 }
 0xad5   : > { %2207 = vrsqrt.f32 %v1447_v55  ;;  %vm1476_vm5 = vmor %vm1474_vm4, %vm1475_vm3  ;;  %vm1484_vm7 = vweird.f32 %v1447_v55 }
 0xad6   : > { %v1467_v61 = vsel %vm1466_vm1, %v2204_v46, %v1463_v57  ;;  %v1470_v8 = vmul.f32 %v2206_v52, %v1469_v58 }
 0xad7   : > { %v1489_v14 = vmul.f32 %v1467_v61, %v2562_v13 }
 0xad8   : > { %v1471_v5 = vmul.f32 0.5, %v1470_v8 }
 0xad9   : > { %v1494_v23 = vmul.f32 %v1492_v54, %v1489_v14 }
 0xada   : > { %v1472_v9 = vsub.f32 1.5, %v1471_v5 }
 0xadb   : > { %v2208_v6 = vpop.eup %2207  ;;  %v1499_v15 = vadd.f32 %v1497_v1, %v1494_v23 }
 0xadc   : > { %v1473_v27 = vmul.f32 %v2206_v52, %v1472_v9  ;;  %v1479_v11 = vmul.f32 %v2208_v6, %v1447_v55  ;;  %vm1485_vm6 = vweird.f32 %v2208_v6 }
 0xadd   : > { %v1502_v12 = vpack.c.bf16 %v1499_v15, %v1498_v7  ;;  %vm1486_vm8 = vmor %vm1484_vm7, %vm1485_vm6  ;;  %vm1765_vm7 = vcmask 123904  }
 0xade   : > { %v1480_v30 = vmul.f32 %v2208_v6, %v1479_v11  ;;  %v1477_v17 = vsel %vm1476_vm5, %v2206_v52, %v1473_v27 }
 0xadf   : > { %2091 = vmatmul.msk.bf16.vlgmr.msrb.gmra.mxu2 %vm511_vm2, %v1502_v12  ;;  %v1490_v20 = vmul.f32 %v1477_v17, %v2569_v22 }
 0xae0   : > { %v1481_v13 = vmul.f32 0.5, %v1480_v30 }
 0xae1   : > { %v1495_v16 = vmul.f32 %v1492_v54, %v1490_v20 }
 0xae2   : > { %v1482_v19 = vsub.f32 1.5, %v1481_v13  ;;  %v2599_v13 = vld [vmem:[%s2310_s22 + $0x10] sm:$0xf]  ;;  %s2641_s22 = scalar_lea.vmem %s2684_s9, %s2363_s23 }
 0xae3   : > { %v1500_v59 = vadd.f32 %v1497_v1, %v1495_v16 }
 0xae4   : > { %v1483_v25 = vmul.f32 %v2208_v6, %v1482_v19  ;;  %v1588_v19 = vperm.slane %v2599_v13, 0 }
 0xae6   : > { %v1487_v26 = vsel %vm1486_vm8, %v2208_v6, %v1483_v25 }
 0xae7   : > { %v1491_v56 = vmul.f32 %v1487_v26, %v2576_v21 }
 0xae9   : > { %v1496_v28 = vmul.f32 %v1492_v54, %v1491_v56 }
 0xaeb   : > { %v1501_v31 = vadd.f32 %v1497_v1, %v1496_v28 }
 0xaed   : > { %v1503_v32 = vpack.c.bf16 %v1501_v31, %v1500_v59 }
 0xaef   : > { %2092 = vmatmul.msk.bf16.vlgmr.msra.gmra.mxu3 %vm511_vm2, %v1503_v32 }
 0xb62   : > { %v1537_v34 = vpop.f32.mrf.mxu2 }
 0xb63   : > { %v1538_v35 = vadd.f32 %v1537_v34, %v1509_v62 }
 0xb65   : > { %v1551_v22 = vmul.f32 0.044715, %v1538_v35  ;;  %v1547_v54 = vmul.f32 0.5, %v1538_v35 }
 0xb67   : > { %v1555_v36 = vmul.f32 %v1551_v22, %v1538_v35 }
 0xb69   : > { %v1559_v0 = vmul.f32 %v1555_v36, %v1538_v35 }
 0xb6a   : > { %v1539_v38 = vpop.f32.mrf.mxu2 }
 0xb6b   : > { %v1563_v41 = vadd.f32 %v1559_v0, %v1538_v35  ;;  %v1540_v42 = vadd.f32 %v1539_v38, %v1509_v62 }
 0xb6d   : > { %v1552_v43 = vmul.f32 0.044715, %v1540_v42  ;;  %v1567_v21 = vmul.f32 0.7978846, %v1563_v41  ;;  %v1548_v55 = vmul.f32 0.5, %v1540_v42 }
 0xb6f   : > { %v1556_v37 = vmul.f32 %v1552_v43, %v1540_v42  ;;  %2209 = vtanh.f32 %v1567_v21 }
 0xb71   : > { %v1560_v44 = vmul.f32 %v1556_v37, %v1540_v42 }
 0xb72   : > { %v1542_v45 = vpop.f32.mrf.mxu3 }
 0xb73   : > { %v1564_v46 = vadd.f32 %v1560_v44, %v1540_v42  ;;  %v1543_v29 = vadd.f32 %v1542_v45, %v1509_v62 }
 0xb75   : > { %v1568_v47 = vmul.f32 0.7978846, %v1564_v46  ;;  %v1553_v40 = vmul.f32 0.044715, %v1543_v29  ;;  %v2210_v48 = vpop.eup %2209  ;;  %v1549_v15 = vmul.f32 0.5, %v1543_v29 }
 0xb76   : > { %v1575_v4 = vadd.f32 1.0, %v2210_v48 }
 0xb77   : > { %2211 = vtanh.f32 %v1568_v47  ;;  %v1557_v10 = vmul.f32 %v1553_v40, %v1543_v29 }
 0xb78   : > { %v1579_v8 = vmul.f32 %v1575_v4, %v1547_v54 }
 0xb79   : > { %v1561_v49 = vmul.f32 %v1557_v10, %v1543_v29 }
 0xb7a   : > { %v1544_v39 = vpop.f32.mrf.mxu3 }
 0xb7b   : > { %v1545_v50 = vadd.f32 %v1544_v39, %v1509_v62  ;;  %v1565_v51 = vadd.f32 %v1561_v49, %v1543_v29 }
 0xb7d   : > { %v2212_v52 = vpop.eup %2211  ;;  %v1554_v53 = vmul.f32 0.044715, %v1545_v50  ;;  %v1569_v61 = vmul.f32 0.7978846, %v1565_v51  ;;  %v1550_v27 = vmul.f32 0.5, %v1545_v50 }
 0xb7e   : > { %v1576_v57 = vadd.f32 1.0, %v2212_v52 }
 0xb7f   : > { %v1558_v58 = vmul.f32 %v1554_v53, %v1545_v50  ;;  %2213 = vtanh.f32 %v1569_v61 }
 0xb80   : > { %v1580_v14 = vmul.f32 %v1576_v57, %v1548_v55 }
 0xb81   : > { %v1562_v1 = vmul.f32 %v1558_v58, %v1545_v50 }
 0xb82   : > { %v1583_v18 = vpack.c.bf16 %v1580_v14, %v1579_v8 }
 0xb83   : > { %v1566_v5 = vadd.f32 %v1562_v1, %v1545_v50 }
 0xb84   : > { %2099 = vmatmul.msk.bf16.vlgmr.msra.gmra.mxu0 %vm1040_vm13, %v1583_v18 }
 0xb85   : > { %v1570_v23 = vmul.f32 0.7978846, %v1566_v5  ;;  %v2214_v9 = vpop.eup %2213 }
 0xb86   : > { %v1577_v6 = vadd.f32 1.0, %v2214_v9 }
 0xb87   : > { %2215 = vtanh.f32 %v1570_v23 }
 0xb88   : > { %v1581_v12 = vmul.f32 %v1577_v6, %v1549_v15  ;;  %v1712_v6 = vperm.slane %v2599_v13, 1 }
 0xb8d   : > { %v2216_v7 = vpop.eup %2215 }
 0xb8e   : > { %v1578_v11 = vadd.f32 1.0, %v2216_v7 }
 0xb90   : > { %v1582_v30 = vmul.f32 %v1578_v11, %v1550_v27  ;;  %v1717_v11 = vperm.slane %v2599_v13, 2 }
 0xb92   : > { %v1584_v17 = vpack.c.bf16 %v1582_v30, %v1581_v12 }
 0xb94   : > { %2100 = vmatmul.msk.bf16.gmra.mxu0 %vm1040_vm13, %v1584_v17 }
 0xc01   : > { %v1610_v20 = vpop.f32.mrf.mxu0 }
 0xc02   : > { %v1611_v25 = vadd.f32 %v1610_v20, %v1588_v19  ;;  %v1722_v20 = vperm.slane %v2599_v13, 3 }
 0xc04   : > { %v1620_v26 = vadd.f32 %v1611_v25, %v2538_v60 }
 0xc06   : > { %v1624_v16 = vsel %vm511_vm2, %v1620_v26, 0.0 }
 0xc07   : > { %1625 = vadd.xlane.f32.xlu0 %v1624_v16 }
 0xc09   : > { %v1612_v56 = vpop.f32.mrf.mxu0 }
 0xc0a   : > { %v1613_v28 = vadd.f32 %v1612_v56, %v1588_v19 }
 0xc0c   : > { %v1621_v59 = vadd.f32 %v1613_v28, %v2543_v63 }
 0xc0e   : > { %v1627_v31 = vsel %vm511_vm2, %v1621_v59, 0.0 }
 0xc0f   : > { %1628 = vadd.xlane.f32.xlu2 %v1627_v31 }
 0xc11   : > { %v1615_v32 = vpop.f32.mrf.mxu0 }
 0xc12   : > { %v1616_v33 = vadd.f32 %v1615_v32, %v1588_v19 }
 0xc14   : > { %v1622_v62 = vadd.f32 %v1616_v33, %v2548_v2 }
 0xc16   : > { %v1630_v34 = vsel %vm511_vm2, %v1622_v62, 0.0 }
 0xc17   : > { %1631 = vadd.xlane.f32.xlu0 %v1630_v34 }
 0xc19   : > { %v1617_v35 = vpop.f32.mrf.mxu0 }
 0xc1a   : > { %v1618_v22 = vadd.f32 %v1617_v35, %v1588_v19 }
 0xc1c   : > { %v1623_v60 = vadd.f32 %v1618_v22, %v2553_v3 }
 0xc1e   : > { %v1633_v36 = vsel %vm511_vm2, %v1623_v60, 0.0 }
 0xc1f   : > { %1634 = vadd.xlane.f32.xlu0 %v1633_v36 }
 0xc7a   : > { %v1626_v0 = vpop.xlane.xlu0 %1625 }
 0xc7b   : > { %v1636_v63 = vmul.f32 %v1626_v0, %v2332_v24 }
 0xc7d   : > { %v1640_v38 = vsub.f32 %v1620_v26, %v1636_v63 }
 0xc7f   : > { %v1644_v41 = vmul.f32 %v1640_v38, %v1640_v38 }
 0xc81   : > { %v1648_v42 = vsel %vm511_vm2, %v1644_v41, 0.0 }
 0xc82   : > { %1649 = vadd.xlane.f32.xlu0 %v1648_v42  ;;  %v1629_v43 = vpop.xlane.xlu2 %1628 }
 0xc83   : > { %v1637_v2 = vmul.f32 %v1629_v43, %v2332_v24 }
 0xc85   : > { %v2613_v21 = vsub.f32 %v1621_v59, %v1637_v2 }
 0xc87   : > { %v1645_v37 = vmul.f32 %v2613_v21, %v2613_v21 }
 0xc89   : > { %v1651_v3 = vsel %vm511_vm2, %v1645_v37, 0.0 }
 0xc8a   : > { %v1632_v44 = vpop.xlane.xlu0 %1631  ;;  %1652 = vadd.xlane.f32.xlu0 %v1651_v3 }
 0xc8b   : > { %v1638_v45 = vmul.f32 %v1632_v44, %v2332_v24 }
 0xc8d   : > { %v2619_v46 = vsub.f32 %v1622_v62, %v1638_v45 }
 0xc8f   : > { %v1646_v29 = vmul.f32 %v2619_v46, %v2619_v46 }
 0xc91   : > { %v1654_v47 = vsel %vm511_vm2, %v1646_v29, 0.0 }
 0xc92   : > { %v1635_v40 = vpop.xlane.xlu0 %1634  ;;  %1655 = vadd.xlane.f32.xlu0 %v1654_v47 }
 0xc93   : > { %v1639_v10 = vmul.f32 %v1635_v40, %v2332_v24 }
 0xc95   : > { %v2625_v48 = vsub.f32 %v1623_v60, %v1639_v10 }
 0xc97   : > { %v1647_v49 = vmul.f32 %v2625_v48, %v2625_v48 }
 0xc99   : > { %v1657_v39 = vsel %vm511_vm2, %v1647_v49, 0.0 }
 0xc9a   : > { %1658 = vadd.xlane.f32.xlu0 %v1657_v39 }
 0xcf5   : > { %v1650_v50 = vpop.xlane.xlu0 %1649 }
 0xcf6   : > { %v1660_v51 = vmul.f32 %v1650_v50, %v2332_v24  ;;  %v1740_v50 = vld [vmem:[%s451_s25 + $0x8] sm:$0xff] }
 0xcf8   : > { %v1664_v4 = vadd.f32 1e-05, %v1660_v51  ;;  %v1739_v51 = vld [vmem:[%s451_s25] sm:$0xff] }
 0xcfa   : > { %2217 = vrsqrt.f32 %v1664_v4  ;;  %vm1674_vm10 = vweird.f32 %v1664_v4 }
 0xcfd   : > { %v1653_v52 = vpop.xlane.xlu0 %1652 }
 0xcfe   : > { %v1661_v53 = vmul.f32 %v1653_v52, %v2332_v24 }
 0xd00   : > { %v2218_v54 = vpop.eup %2217  ;;  %v1665_v55 = vadd.f32 1e-05, %v1661_v53 }
 0xd01   : > { %v1669_v57 = vmul.f32 %v2218_v54, %v1664_v4  ;;  %vm1675_vm9 = vweird.f32 %v2218_v54 }
 0xd02   : > { %2219 = vrsqrt.f32 %v1665_v55  ;;  %vm1676_vm11 = vmor %vm1674_vm10, %vm1675_vm9  ;;  %vm1684_vm14 = vweird.f32 %v1665_v55 }
 0xd03   : > { %v1670_v58 = vmul.f32 %v2218_v54, %v1669_v57 }
 0xd05   : > { %v1671_v61 = vmul.f32 0.5, %v1670_v58  ;;  %v1656_v8 = vpop.xlane.xlu0 %1655 }
 0xd06   : > { %v1662_v14 = vmul.f32 %v1656_v8, %v2332_v24 }
 0xd07   : > { %v1672_v1 = vsub.f32 1.5, %v1671_v61 }
 0xd08   : > { %v2220_v18 = vpop.eup %2219  ;;  %v1666_v5 = vadd.f32 1e-05, %v1662_v14 }
 0xd09   : > { %v1673_v23 = vmul.f32 %v2218_v54, %v1672_v1  ;;  %v1679_v9 = vmul.f32 %v2220_v18, %v1665_v55  ;;  %vm1685_vm12 = vweird.f32 %v2220_v18 }
 0xd0a   : > { %2221 = vrsqrt.f32 %v1666_v5  ;;  %vm1686_vm15 = vmor %vm1684_vm14, %vm1685_vm12  ;;  %vm1694_vm1 = vweird.f32 %v1666_v5 }
 0xd0b   : > { %v1677_v7 = vsel %vm1676_vm11, %v2218_v54, %v1673_v23  ;;  %v1680_v15 = vmul.f32 %v2220_v18, %v1679_v9 }
 0xd0c   : > { %v1708_v27 = vmul.f32 %v1677_v7, %v1640_v38 }
 0xd0d   : > { %v1681_v12 = vmul.f32 0.5, %v1680_v15  ;;  %v1659_v30 = vpop.xlane.xlu0 %1658 }
 0xd0e   : > { %v1663_v17 = vmul.f32 %v1659_v30, %v2332_v24  ;;  %v1713_v19 = vmul.f32 %v1712_v6, %v1708_v27 }
 0xd0f   : > { %v1682_v25 = vsub.f32 1.5, %v1681_v12 }
 0xd10   : > { %v2222_v26 = vpop.eup %2221  ;;  %v1667_v16 = vadd.f32 1e-05, %v1663_v17  ;;  %v1718_v56 = vadd.f32 %v1717_v11, %v1713_v19 }
 0xd11   : > { %v1683_v28 = vmul.f32 %v2220_v18, %v1682_v25  ;;  %v1689_v59 = vmul.f32 %v2222_v26, %v1666_v5  ;;  %vm1695_vm0 = vweird.f32 %v2222_v26 }
 0xd12   : > { %2223 = vrsqrt.f32 %v1667_v16  ;;  %v1723_v24 = vmul.f32 %v1722_v20, %v1718_v56  ;;  %1767 = vst.msk [vmem:[%s2641_s22] sm:$0xff] %vm511_vm2, %v1718_v56  ;;  %vm1696_vm3 = vmor %vm1694_vm1, %vm1695_vm0  ;;  %vm1704_vm5 = vweird.f32 %v1667_v16 }
 0xd13   : > { %v1687_v13 = vsel %vm1686_vm15, %v2220_v18, %v1683_v28  ;;  %v1690_v31 = vmul.f32 %v2222_v26, %v1689_v59 }
 0xd14   : > { %v1727_v32 = vsel %vm511_vm2, %v1723_v24, 0.0  ;;  %v1709_v33 = vmul.f32 %v1687_v13, %v2613_v21 }
 0xd15   : > { %v1691_v62 = vmul.f32 0.5, %v1690_v31  ;;  %1728 = vadd.xlane.f32.xlu0 %v1727_v32 }
 0xd16   : > { %v1714_v34 = vmul.f32 %v1712_v6, %v1709_v33 }
 0xd17   : > { %v1692_v35 = vsub.f32 1.5, %v1691_v62 }
 0xd18   : > { %v2224_v22 = vpop.eup %2223  ;;  %v1719_v60 = vadd.f32 %v1717_v11, %v1714_v34 }
 0xd19   : > { %v1693_v36 = vmul.f32 %v2222_v26, %v1692_v35  ;;  %v1699_v0 = vmul.f32 %v2224_v22, %v1667_v16  ;;  %vm1705_vm4 = vweird.f32 %v2224_v22 }
 0xd1a   : > { %v1724_v63 = vmul.f32 %v1722_v20, %v1719_v60  ;;  %1768 = vst.msk [vmem:[%s2641_s22 + $0x8] sm:$0xff] %vm511_vm2, %v1719_v60  ;;  %vm1706_vm6 = vmor %vm1704_vm5, %vm1705_vm4 }
 0xd1b   : > { %v1697_v38 = vsel %vm1696_vm3, %v2222_v26, %v1693_v36  ;;  %v1700_v41 = vmul.f32 %v2224_v22, %v1699_v0 }
 0xd1c   : > { %v1730_v42 = vsel %vm511_vm2, %v1724_v63, 0.0  ;;  %v1710_v43 = vmul.f32 %v1697_v38, %v2619_v46 }
 0xd1d   : > { %v1701_v2 = vmul.f32 0.5, %v1700_v41  ;;  %1731 = vadd.xlane.f32.xlu1 %v1730_v42 }
 0xd1e   : > { %v1715_v21 = vmul.f32 %v1712_v6, %v1710_v43 }
 0xd1f   : > { %v1702_v37 = vsub.f32 1.5, %v1701_v2 }
 0xd20   : > { %v1720_v3 = vadd.f32 %v1717_v11, %v1715_v21 }
 0xd21   : > { %v1703_v44 = vmul.f32 %v2224_v22, %v1702_v37 }
 0xd22   : > { %v1725_v45 = vmul.f32 %v1722_v20, %v1720_v3  ;;  %1769 = vst.msk [vmem:[%s2641_s22 + $0x10] sm:$0xff] %vm511_vm2, %v1720_v3 }
 0xd23   : > { %v1707_v29 = vsel %vm1706_vm6, %v2224_v22, %v1703_v44 }
 0xd24   : > { %v1733_v47 = vsel %vm511_vm2, %v1725_v45, 0.0  ;;  %v1711_v40 = vmul.f32 %v1707_v29, %v2625_v48 }
 0xd25   : > { %1734 = vadd.xlane.f32.xlu0 %v1733_v47 }
 0xd26   : > { %v1716_v46 = vmul.f32 %v1712_v6, %v1711_v40 }
 0xd28   : > { %v1721_v10 = vadd.f32 %v1717_v11, %v1716_v46 }
 0xd2a   : > { %v1726_v49 = vmul.f32 %v1722_v20, %v1721_v10  ;;  %1770 = vst.msk [vmem:[%s2641_s22 + $0x18] sm:$0xff] %vm511_vm2, %v1721_v10 }
 0xd2c   : > { %v1736_v39 = vsel %vm511_vm2, %v1726_v49, 0.0  ;;  %vm1763_vm2 = vcmask 1040384  }
 0xd2d   : > { %1737 = vadd.xlane.f32.xlu1 %v1736_v39 }
 0xd88   : > { %v1729_v4 = vpop.xlane.xlu0 %1728 }
 0xd89   : > { %v1741_v48 = vmul.f32 %v1739_v51, %v1729_v4 }
 0xd8b   : > { %v1743_v55 = vsel %vm1040_vm13, %v1741_v48, 0.0 }
 0xd90   : > { %v1732_v52 = vpop.xlane.xlu1 %1731 }
 0xd91   : > { %v1742_v53 = vmul.f32 %v1740_v50, %v1732_v52 }
 0xd93   : > { %v1744_v54 = vsel %vm1040_vm13, %v1742_v53, 0.0 }
 0xd94   : > { %v1745_v57 = vadd.f32 %v1744_v54, %v1743_v55 }
 0xd96   : > { %v1746_v58 = vrot.slane %v1745_v57, 4 }
 0xd98   : > { %v1735_v61 = vpop.xlane.xlu0 %1734  ;;  %v1747_v14 = vadd.f32 %v1746_v58, %v1745_v57 }
 0xd99   : > { %v1752_v8 = vmul.f32 %v1739_v51, %v1735_v61 }
 0xd9a   : > { %v1748_v9 = vrot.slane %v1747_v14, 2 }
 0xd9b   : > { %v1754_v5 = vsel %vm1040_vm13, %v1752_v8, 0.0 }
 0xd9c   : > { %v1749_v15 = vadd.f32 %v1748_v9, %v1747_v14 }
 0xd9e   : > { %v1750_v12 = vrot.slane %v1749_v15, 1 }
 0xda0   : > { %v1738_v1 = vpop.xlane.xlu1 %1737  ;;  %v1751_v19 = vadd.f32 %v1750_v12, %v1749_v15 }
 0xda1   : > { %v1753_v18 = vmul.f32 %v1740_v50, %v1738_v1 }
 0xda3   : > { %v1755_v23 = vsel %vm1040_vm13, %v1753_v18, 0.0 }
 0xda4   : > { %v1756_v6 = vadd.f32 %v1755_v23, %v1754_v5 }
 0xda6   : > { %v1757_v7 = vrot.slane %v1756_v6, 4 }
 0xda8   : > { %v1758_v27 = vadd.f32 %v1757_v7, %v1756_v6 }
 0xdaa   : > { %v1759_v11 = vrot.slane %v1758_v27, 2 }
 0xdac   : > { %v1760_v30 = vadd.f32 %v1759_v11, %v1758_v27 }
 0xdae   : > { %v1761_v17 = vrot.slane %v1760_v30, 1 }
 0xdb0   : > { %v1762_v20 = vadd.f32 %v1761_v17, %v1760_v30 }
 0xdb2   : > { %v1764_v25 = vsel %vm1763_vm2, %v1751_v19, %v1762_v20 }
 0xdb3   : > { %1766 = vst.msk [vmem:[%s455_s28] sm:$0x3] %vm1765_vm7, %v1764_v25 }
 0xdb4 PF: > { %s20_s30 = sadd.s32 1, %s2231_s30  }
 0xdb5   : > { %p17_p4 = scmp.ge.s32.totalorder %s20_s30, 4  }
 0xdb7   :  { %19 = sbr.rel (!%p17_p4) target bundleno = 1 (0x1), region = 116 }

</bundles_post_ra>
